<compile_context>
chip_gen: v7x
topology: tpu7x:2x2x1
jax: 0.10.0
libtpu: 0.0.40
codegen_flags: <defaults>
</compile_context>

<pallas_src>
import functools

import jax
import jax.numpy as jnp
from jax.experimental import pallas as pl
from jax.experimental.pallas import tpu as pltpu


def _round_up(a, m):
    return (a + m - 1) // m * m


def _pick_tile_rows(h_out, w_out, ss, hq, wq, c1, kp, c2p,
                    *, budget_bytes=40 * 1024 * 1024, m_cap=2048):
    """Largest divisor of h_out whose estimated VMEM footprint fits the budget."""
    # bf16 input block: last dim lane-padded to 128, 2nd-to-last sublane-padded
    # to 16; double-buffered by the pipeline.
    x_block = 2 * ss * hq * _round_up(wq, 16) * _round_up(max(c1, 1), 128) * 2
    w_block = 2 * kp * c2p * 2
    sb_block = 2 * 2 * 8 * c2p * 4                       # scale + bias blocks
    fixed = x_block + w_block + sb_block
    for tr in range(h_out, 0, -1):
        if h_out % tr:
            continue
        patch = tr * _round_up(w_out, 16) * kp * 2       # scratch (1 copy)
        out_block = 2 * tr * w_out * c2p * 2             # bf16, double-buffered
        if tr * w_out <= m_cap and fixed + patch + out_block <= budget_bytes:
            return tr
    return 1


def conv_block_pallas(x_nchw, weight, gamma, beta, running_mean, running_var,
                      *, stride=1, eps=1e-3):
    """Forward of ConvBlock: Conv2d(bias=False, pad=k//2) + BN(eval) + SiLU."""
    n, c1, h, w = x_nchw.shape
    c2, c1_w, kh, kw = weight.shape
    assert c1 == c1_w and kh == kw
    k = kh
    pad = k // 2
    s = stride
    h_out = (h + 2 * pad - k) // s + 1
    w_out = (w + 2 * pad - k) // s + 1

    kkc1 = k * k * c1
    kp = _round_up(kkc1, 128)                            # lane-dense contraction
    c2p = _round_up(c2, 256) if c2 >= 256 else _round_up(c2, 128)

    # ---- wrapper-side glue (activation-sized ops fuse into one XLA pass) ----
    x_nhwc = jnp.transpose(x_nchw, (0, 2, 3, 1))
    x_padded = jnp.pad(x_nhwc, ((0, 0), (pad, pad), (pad, pad), (0, 0)))
    x_padded = x_padded.astype(jnp.bfloat16)
    hp, wp = h + 2 * pad, w + 2 * pad

    if s == 1:
        ss, hq, wq = 1, hp, wp
        x_phases = x_padded.reshape(n, 1, hp, wp, c1)
    else:
        # space-to-depth phase split: plane (pi,pj) holds x_padded[s*r+pi, s*c+pj]
        hq, wq = -(-hp // s), -(-wp // s)
        x_p2 = jnp.pad(x_padded,
                       ((0, 0), (0, hq * s - hp), (0, wq * s - wp), (0, 0)))
        x_phases = (x_p2.reshape(n, hq, s, wq, s, c1)
                    .transpose(0, 2, 4, 1, 3, 5)
                    .reshape(n, s * s, hq, wq, c1))
        ss = s * s

    # weights: (c2, c1, kh, kw) -> (k*k*c1, c2); K index = (di*k + dj)*c1 + ci
    w_flat = jnp.transpose(weight.astype(jnp.float32),
                           (2, 3, 1, 0)).reshape(kkc1, c2)
    w_flat = jnp.pad(w_flat, ((0, kp - kkc1), (0, c2p - c2))).astype(jnp.bfloat16)

    # BatchNorm (inference): per-channel f32 scale/bias applied post-matmul
    scale = gamma / jnp.sqrt(running_var + eps)
    bias = beta - running_mean * scale
    scale_p = jnp.pad(scale.astype(jnp.float32), (0, c2p - c2)).reshape(1, c2p)
    bias_p = jnp.pad(bias.astype(jnp.float32), (0, c2p - c2)).reshape(1, c2p)

    tile_rows = _pick_tile_rows(h_out, w_out, ss, hq, wq, c1, kp, c2p)
    n_row_tiles = h_out // tile_rows
    m_tile = tile_rows * w_out

    def kernel(x_ref, w_ref, scale_ref, bias_ref, o_ref, patch_ref):
        # x_ref     : (1, ss, hq, wq, c1)    bf16  (phase-split padded image)
        # w_ref     : (kp, c2p)              bf16
        # scale_ref : (1, c2p)               f32
        # bias_ref  : (1, c2p)               f32
        # o_ref     : (1, m_tile, c2p)       bf16
        # patch_ref : (tile_rows, w_out, kp) bf16  (im2col scratch)
        if n_row_tiles == 1:
            row0 = 0                                    # fully static slices
        else:
            row0 = pl.multiple_of(pl.program_id(1) * tile_rows, tile_rows)

        if kp > kkc1:   # zero the K padding (scratch is stale between tiles)
            patch_ref[:, :, kkc1:] = jnp.zeros(
                (tile_rows, w_out, kp - kkc1), jnp.bfloat16)

        # Gather the k*k taps into the patch scratch: dense (unstrided) slices,
        # no per-tap reshape, no per-tap accumulator read-modify-write.
        for di in range(k):
            for dj in range(k):
                t = di * k + dj
                plane = (di % s) * s + (dj % s)
                win = x_ref[0, plane,
                            pl.ds(row0 + di // s, tile_rows),
                            pl.ds(dj // s, w_out), :]
                patch_ref[:, :, pl.ds(t * c1, c1)] = win

        # Single MXU matmul with K = k*k*c1 (padded to 128), f32 accumulation.
        lhs = patch_ref[...].reshape(m_tile, kp)
        acc = jnp.dot(lhs, w_ref[...], preferred_element_type=jnp.float32)
        y = acc * scale_ref[...] + bias_ref[...]          # BN (f32)
        o_ref[0, :, :] = (y * jax.nn.sigmoid(y)).astype(o_ref.dtype)   # SiLU

    flops = 2 * n * h_out * w_out * kp * c2p
    bytes_accessed = (x_phases.size * 2 + w_flat.size * 2 + 2 * c2p * 4
                      + n * h_out * w_out * c2p * 2)
    cost = pl.CostEstimate(flops=flops,
                           transcendentals=n * h_out * w_out * c2p,
                           bytes_accessed=bytes_accessed)

    out = pl.pallas_call(
        kernel,
        out_shape=jax.ShapeDtypeStruct((n, h_out * w_out, c2p), jnp.bfloat16),
        grid_spec=pltpu.PrefetchScalarGridSpec(
            num_scalar_prefetch=0,
            grid=(n, n_row_tiles),
            in_specs=[
                pl.BlockSpec((1, ss, hq, wq, c1), lambda i, r: (i, 0, 0, 0, 0)),
                pl.BlockSpec((kp, c2p), lambda i, r: (0, 0)),
                pl.BlockSpec((1, c2p), lambda i, r: (0, 0)),
                pl.BlockSpec((1, c2p), lambda i, r: (0, 0)),
            ],
            out_specs=pl.BlockSpec((1, m_tile, c2p), lambda i, r: (i, r, 0)),
            scratch_shapes=[pltpu.VMEM((tile_rows, w_out, kp), jnp.bfloat16)],
        ),
        compiler_params=pltpu.CompilerParams(
            dimension_semantics=("parallel", "parallel"),
            # Budgeted tiles stay <= ~40 MiB, so 64 MiB is portable to v7x;
            # v5e/v6e (128 MiB physical) have headroom on top of this.
            vmem_limit_bytes=64 * 1024 * 1024),
        cost_estimate=cost,
    )(x_phases, w_flat, scale_p, bias_p)

    out = out[:, :, :c2].reshape(n, h_out, w_out, c2)    # drop lane padding
    return jnp.transpose(out, (0, 3, 1, 2)).astype(x_nchw.dtype)   # NHWC->NCHW


def _reference(x_nchw, weight, gamma, beta, running_mean, running_var,
               *, stride=1, eps=1e-3):
    """Pure-JAX f32 reference (lax conv) for correctness checking."""
    k = weight.shape[-1]
    pad = k // 2
    y = jax.lax.conv_general_dilated(
        x_nchw.astype(jnp.float32), weight.astype(jnp.float32),
        window_strides=(stride, stride),
        padding=((pad, pad), (pad, pad)),
        dimension_numbers=("NCHW", "OIHW", "NCHW"),
    )
    scale = gamma / jnp.sqrt(running_var + eps)
    bias = beta - running_mean * scale
    y = y * scale[None, :, None, None] + bias[None, :, None, None]
    return y * jax.nn.sigmoid(y)


if __name__ == "__main__":
    key = jax.random.PRNGKey(0)
    k_x, k_w, k_g, k_b, k_m, k_v = jax.random.split(key, 6)

    # small shapes consistent with the module: c1=4, c2=8, k=3
    N, C1, H, W = 2, 4, 16, 16
    C2, K = 8, 3

    x = jax.random.normal(k_x, (N, C1, H, W), dtype=jnp.float32)
    weight = jax.random.normal(k_w, (C2, C1, K, K), dtype=jnp.float32) * 0.1
    gamma = jax.random.normal(k_g, (C2,), dtype=jnp.float32) * 0.1 + 1.0
    beta = jax.random.normal(k_b, (C2,), dtype=jnp.float32) * 0.1
    running_mean = jax.random.normal(k_m, (C2,), dtype=jnp.float32) * 0.1
    running_var = jax.random.uniform(k_v, (C2,), dtype=jnp.float32,
                                     minval=0.5, maxval=1.5)

    # module uses BatchNorm2d(eps=0.001); stride=1 and the stride=2 path are
    # both exercised (review correctness concern).
    for stride in (1, 2):
        fn = jax.jit(functools.partial(conv_block_pallas, stride=stride,
                                       eps=1e-3))
        out = jax.block_until_ready(fn(x, weight, gamma, beta,
                                       running_mean, running_var))
        ref = _reference(x, weight, gamma, beta, running_mean, running_var,
                         stride=stride, eps=1e-3)
        assert out.shape == ref.shape, (out.shape, ref.shape)
        # bf16 matmul operands + bf16 output store: allow bf16-level rounding.
        max_err = float(jnp.max(jnp.abs(out - ref)))
        assert max_err < 5e-2, f"stride={stride}: max abs err = {max_err}"

    print("KERNEL_OK")
</pallas_src>

<mosaic_0001>
module attributes {stable_mosaic.version = 11 : i64} {
  func.func @kernel(%arg0: i32, %arg1: i32, %arg2: memref<1x1x18x18x4xbf16, #tpu.memory_space<vmem>>, %arg3: memref<128x128xbf16, #tpu.memory_space<vmem>>, %arg4: memref<1x128xf32, #tpu.memory_space<vmem>>, %arg5: memref<1x128xf32, #tpu.memory_space<vmem>>, %arg6: memref<1x256x128xbf16, #tpu.memory_space<vmem>>, %arg7: memref<16x16x128xbf16, #tpu.memory_space<vmem>>) attributes {dimension_semantics = [#tpu.dimension_semantics<parallel>, #tpu.dimension_semantics<parallel>], iteration_bounds = array<i64: 2, 1>, scalar_prefetch = 0 : i64, scratch_operands = 1 : i64, tpu.core_type = #tpu.core_type<tc>, window_params = [{transform_indices = @transform_0, window_bounds = array<i64: 1, 1, 18, 18, 4>}, {pipeline_mode = #tpu.pipeline_mode<synchronous>, transform_indices = @transform_1, window_bounds = array<i64: 128, 128>}, {pipeline_mode = #tpu.pipeline_mode<synchronous>, transform_indices = @transform_2, window_bounds = array<i64: 1, 128>}, {pipeline_mode = #tpu.pipeline_mode<synchronous>, transform_indices = @transform_3, window_bounds = array<i64: 1, 128>}, {transform_indices = @transform_4, window_bounds = array<i64: 1, 256, 128>}]} {
    %cst = arith.constant 0.000000e+00 : bf16
    %0 = vector.broadcast %cst : bf16 to vector<16x16x92xbf16>
    %c0 = arith.constant 0 : index
    %c0_0 = arith.constant 0 : index
    %c36 = arith.constant 36 : index
    %1 = vector.load %arg7[%c0, %c0_0, %c36] : memref<16x16x128xbf16, #tpu.memory_space<vmem>>, vector<16x16x92xbf16>
    tpu.vector_store %arg7[%c0, %c0_0, %c36], %0 {strides = array<i32>} : memref<16x16x128xbf16, #tpu.memory_space<vmem>>, vector<16x16x92xbf16>,
    %c0_1 = arith.constant 0 : index
    %c0_2 = arith.constant 0 : index
    %c0_3 = arith.constant 0 : index
    %c0_4 = arith.constant 0 : index
    %c0_5 = arith.constant 0 : index
    %2 = vector.load %arg2[%c0_1, %c0_2, %c0_3, %c0_4, %c0_5] : memref<1x1x18x18x4xbf16, #tpu.memory_space<vmem>>, vector<1x1x16x16x4xbf16>
    %3 = vector.shape_cast %2 : vector<1x1x16x16x4xbf16> to vector<16x16x4xbf16>
    %c0_6 = arith.constant 0 : index
    %c0_7 = arith.constant 0 : index
    %c0_8 = arith.constant 0 : index
    %4 = vector.load %arg7[%c0_6, %c0_7, %c0_8] : memref<16x16x128xbf16, #tpu.memory_space<vmem>>, vector<16x16x4xbf16>
    tpu.vector_store %arg7[%c0_6, %c0_7, %c0_8], %3 {strides = array<i32>} : memref<16x16x128xbf16, #tpu.memory_space<vmem>>, vector<16x16x4xbf16>,
    %c0_9 = arith.constant 0 : index
    %c0_10 = arith.constant 0 : index
    %c0_11 = arith.constant 0 : index
    %c1 = arith.constant 1 : index
    %c0_12 = arith.constant 0 : index
    %5 = vector.load %arg2[%c0_9, %c0_10, %c0_11, %c1, %c0_12] : memref<1x1x18x18x4xbf16, #tpu.memory_space<vmem>>, vector<1x1x16x16x4xbf16>
    %6 = vector.shape_cast %5 : vector<1x1x16x16x4xbf16> to vector<16x16x4xbf16>
    %c0_13 = arith.constant 0 : index
    %c0_14 = arith.constant 0 : index
    %c4 = arith.constant 4 : index
    %7 = vector.load %arg7[%c0_13, %c0_14, %c4] : memref<16x16x128xbf16, #tpu.memory_space<vmem>>, vector<16x16x4xbf16>
    tpu.vector_store %arg7[%c0_13, %c0_14, %c4], %6 {strides = array<i32>} : memref<16x16x128xbf16, #tpu.memory_space<vmem>>, vector<16x16x4xbf16>,
    %c0_15 = arith.constant 0 : index
    %c0_16 = arith.constant 0 : index
    %c0_17 = arith.constant 0 : index
    %c2 = arith.constant 2 : index
    %c0_18 = arith.constant 0 : index
    %8 = vector.load %arg2[%c0_15, %c0_16, %c0_17, %c2, %c0_18] : memref<1x1x18x18x4xbf16, #tpu.memory_space<vmem>>, vector<1x1x16x16x4xbf16>
    %9 = vector.shape_cast %8 : vector<1x1x16x16x4xbf16> to vector<16x16x4xbf16>
    %c0_19 = arith.constant 0 : index
    %c0_20 = arith.constant 0 : index
    %c8 = arith.constant 8 : index
    %10 = vector.load %arg7[%c0_19, %c0_20, %c8] : memref<16x16x128xbf16, #tpu.memory_space<vmem>>, vector<16x16x4xbf16>
    tpu.vector_store %arg7[%c0_19, %c0_20, %c8], %9 {strides = array<i32>} : memref<16x16x128xbf16, #tpu.memory_space<vmem>>, vector<16x16x4xbf16>,
    %c0_21 = arith.constant 0 : index
    %c0_22 = arith.constant 0 : index
    %c1_23 = arith.constant 1 : index
    %c0_24 = arith.constant 0 : index
    %c0_25 = arith.constant 0 : index
    %11 = vector.load %arg2[%c0_21, %c0_22, %c1_23, %c0_24, %c0_25] : memref<1x1x18x18x4xbf16, #tpu.memory_space<vmem>>, vector<1x1x16x16x4xbf16>
    %12 = vector.shape_cast %11 : vector<1x1x16x16x4xbf16> to vector<16x16x4xbf16>
    %c0_26 = arith.constant 0 : index
    %c0_27 = arith.constant 0 : index
    %c12 = arith.constant 12 : index
    %13 = vector.load %arg7[%c0_26, %c0_27, %c12] : memref<16x16x128xbf16, #tpu.memory_space<vmem>>, vector<16x16x4xbf16>
    tpu.vector_store %arg7[%c0_26, %c0_27, %c12], %12 {strides = array<i32>} : memref<16x16x128xbf16, #tpu.memory_space<vmem>>, vector<16x16x4xbf16>,
    %c0_28 = arith.constant 0 : index
    %c0_29 = arith.constant 0 : index
    %c1_30 = arith.constant 1 : index
    %c1_31 = arith.constant 1 : index
    %c0_32 = arith.constant 0 : index
    %14 = vector.load %arg2[%c0_28, %c0_29, %c1_30, %c1_31, %c0_32] : memref<1x1x18x18x4xbf16, #tpu.memory_space<vmem>>, vector<1x1x16x16x4xbf16>
    %15 = vector.shape_cast %14 : vector<1x1x16x16x4xbf16> to vector<16x16x4xbf16>
    %c0_33 = arith.constant 0 : index
    %c0_34 = arith.constant 0 : index
    %c16 = arith.constant 16 : index
    %16 = vector.load %arg7[%c0_33, %c0_34, %c16] : memref<16x16x128xbf16, #tpu.memory_space<vmem>>, vector<16x16x4xbf16>
    tpu.vector_store %arg7[%c0_33, %c0_34, %c16], %15 {strides = array<i32>} : memref<16x16x128xbf16, #tpu.memory_space<vmem>>, vector<16x16x4xbf16>,
    %c0_35 = arith.constant 0 : index
    %c0_36 = arith.constant 0 : index
    %c1_37 = arith.constant 1 : index
    %c2_38 = arith.constant 2 : index
    %c0_39 = arith.constant 0 : index
    %17 = vector.load %arg2[%c0_35, %c0_36, %c1_37, %c2_38, %c0_39] : memref<1x1x18x18x4xbf16, #tpu.memory_space<vmem>>, vector<1x1x16x16x4xbf16>
    %18 = vector.shape_cast %17 : vector<1x1x16x16x4xbf16> to vector<16x16x4xbf16>
    %c0_40 = arith.constant 0 : index
    %c0_41 = arith.constant 0 : index
    %c20 = arith.constant 20 : index
    %19 = vector.load %arg7[%c0_40, %c0_41, %c20] : memref<16x16x128xbf16, #tpu.memory_space<vmem>>, vector<16x16x4xbf16>
    tpu.vector_store %arg7[%c0_40, %c0_41, %c20], %18 {strides = array<i32>} : memref<16x16x128xbf16, #tpu.memory_space<vmem>>, vector<16x16x4xbf16>,
    %c0_42 = arith.constant 0 : index
    %c0_43 = arith.constant 0 : index
    %c2_44 = arith.constant 2 : index
    %c0_45 = arith.constant 0 : index
    %c0_46 = arith.constant 0 : index
    %20 = vector.load %arg2[%c0_42, %c0_43, %c2_44, %c0_45, %c0_46] : memref<1x1x18x18x4xbf16, #tpu.memory_space<vmem>>, vector<1x1x16x16x4xbf16>
    %21 = vector.shape_cast %20 : vector<1x1x16x16x4xbf16> to vector<16x16x4xbf16>
    %c0_47 = arith.constant 0 : index
    %c0_48 = arith.constant 0 : index
    %c24 = arith.constant 24 : index
    %22 = vector.load %arg7[%c0_47, %c0_48, %c24] : memref<16x16x128xbf16, #tpu.memory_space<vmem>>, vector<16x16x4xbf16>
    tpu.vector_store %arg7[%c0_47, %c0_48, %c24], %21 {strides = array<i32>} : memref<16x16x128xbf16, #tpu.memory_space<vmem>>, vector<16x16x4xbf16>,
    %c0_49 = arith.constant 0 : index
    %c0_50 = arith.constant 0 : index
    %c2_51 = arith.constant 2 : index
    %c1_52 = arith.constant 1 : index
    %c0_53 = arith.constant 0 : index
    %23 = vector.load %arg2[%c0_49, %c0_50, %c2_51, %c1_52, %c0_53] : memref<1x1x18x18x4xbf16, #tpu.memory_space<vmem>>, vector<1x1x16x16x4xbf16>
    %24 = vector.shape_cast %23 : vector<1x1x16x16x4xbf16> to vector<16x16x4xbf16>
    %c0_54 = arith.constant 0 : index
    %c0_55 = arith.constant 0 : index
    %c28 = arith.constant 28 : index
    %25 = vector.load %arg7[%c0_54, %c0_55, %c28] : memref<16x16x128xbf16, #tpu.memory_space<vmem>>, vector<16x16x4xbf16>
    tpu.vector_store %arg7[%c0_54, %c0_55, %c28], %24 {strides = array<i32>} : memref<16x16x128xbf16, #tpu.memory_space<vmem>>, vector<16x16x4xbf16>,
    %c0_56 = arith.constant 0 : index
    %c0_57 = arith.constant 0 : index
    %c2_58 = arith.constant 2 : index
    %c2_59 = arith.constant 2 : index
    %c0_60 = arith.constant 0 : index
    %26 = vector.load %arg2[%c0_56, %c0_57, %c2_58, %c2_59, %c0_60] : memref<1x1x18x18x4xbf16, #tpu.memory_space<vmem>>, vector<1x1x16x16x4xbf16>
    %27 = vector.shape_cast %26 : vector<1x1x16x16x4xbf16> to vector<16x16x4xbf16>
    %c0_61 = arith.constant 0 : index
    %c0_62 = arith.constant 0 : index
    %c32 = arith.constant 32 : index
    %28 = vector.load %arg7[%c0_61, %c0_62, %c32] : memref<16x16x128xbf16, #tpu.memory_space<vmem>>, vector<16x16x4xbf16>
    tpu.vector_store %arg7[%c0_61, %c0_62, %c32], %27 {strides = array<i32>} : memref<16x16x128xbf16, #tpu.memory_space<vmem>>, vector<16x16x4xbf16>,
    %c0_63 = arith.constant 0 : index
    %c0_64 = arith.constant 0 : index
    %c0_65 = arith.constant 0 : index
    %29 = vector.load %arg7[%c0_63, %c0_64, %c0_65] : memref<16x16x128xbf16, #tpu.memory_space<vmem>>, vector<16x16x128xbf16>
    %30 = vector.shape_cast %29 : vector<16x16x128xbf16> to vector<256x128xbf16>
    %c0_66 = arith.constant 0 : index
    %c0_67 = arith.constant 0 : index
    %31 = vector.load %arg3[%c0_66, %c0_67] : memref<128x128xbf16, #tpu.memory_space<vmem>>, vector<128x128xbf16>
    %cst_68 = arith.constant dense<0.000000e+00> : vector<256x128xf32>
    %32 = tpu.matmul %30, %31, %cst_68 {dimension_numbers = #tpu.dot_dimension_numbers<[1], [0], [0], [1], [0, 0, 1, 1], [], []>} : vector<256x128xbf16>, vector<128x128xbf16>, vector<256x128xf32> -> vector<256x128xf32>
    %c0_69 = arith.constant 0 : index
    %c0_70 = arith.constant 0 : index
    %33 = vector.load %arg4[%c0_69, %c0_70] : memref<1x128xf32, #tpu.memory_space<vmem>>, vector<1x128xf32>
    %34 = vector.broadcast %33 : vector<1x128xf32> to vector<256x128xf32>
    %35 = arith.mulf %32, %34 : vector<256x128xf32>
    %c0_71 = arith.constant 0 : index
    %c0_72 = arith.constant 0 : index
    %36 = vector.load %arg5[%c0_71, %c0_72] : memref<1x128xf32, #tpu.memory_space<vmem>>, vector<1x128xf32>
    %37 = vector.broadcast %36 : vector<1x128xf32> to vector<256x128xf32>
    %38 = arith.addf %35, %37 : vector<256x128xf32>
    %39 = arith.negf %38 : vector<256x128xf32>
    %40 = math.exp %39 : vector<256x128xf32>
    %cst_73 = arith.constant 1.000000e+00 : f32
    %41 = vector.broadcast %cst_73 : f32 to vector<256x128xf32>
    %42 = arith.addf %41, %40 : vector<256x128xf32>
    %43 = arith.divf %41, %42 : vector<256x128xf32>
    %44 = arith.mulf %38, %43 : vector<256x128xf32>
    %45 = arith.truncf %44 : vector<256x128xf32> to vector<256x128xbf16>
    %c0_74 = arith.constant 0 : index
    %c0_75 = arith.constant 0 : index
    %c0_76 = arith.constant 0 : index
    %46 = vector.load %arg6[%c0_74, %c0_75, %c0_76] : memref<1x256x128xbf16, #tpu.memory_space<vmem>>, vector<1x256x128xbf16>
    %47 = vector.shape_cast %46 : vector<1x256x128xbf16> to vector<256x128xbf16>
    %48 = vector.shape_cast %45 : vector<256x128xbf16> to vector<1x256x128xbf16>
    tpu.vector_store %arg6[%c0_74, %c0_75, %c0_76], %48 {strides = array<i32>} : memref<1x256x128xbf16, #tpu.memory_space<vmem>>, vector<1x256x128xbf16>,
    return
  }
  func.func @transform_0(%arg0: i32, %arg1: i32) -> (i32, i32, i32, i32, i32) {
    %c0_i32 = arith.constant 0 : i32
    %c0_i32_0 = arith.constant 0 : i32
    %c0_i32_1 = arith.constant 0 : i32
    %c0_i32_2 = arith.constant 0 : i32
    %c0_i32_3 = arith.constant 0 : i32
    return %arg0, %c0_i32, %c0_i32_0, %c0_i32_1, %c0_i32_2 : i32, i32, i32, i32, i32
  }
  func.func @transform_1(%arg0: i32, %arg1: i32) -> (i32, i32) {
    %c0_i32 = arith.constant 0 : i32
    %c0_i32_0 = arith.constant 0 : i32
    %c0_i32_1 = arith.constant 0 : i32
    return %c0_i32, %c0_i32_0 : i32, i32
  }
  func.func @transform_2(%arg0: i32, %arg1: i32) -> (i32, i32) {
    %c0_i32 = arith.constant 0 : i32
    %c0_i32_0 = arith.constant 0 : i32
    %c0_i32_1 = arith.constant 0 : i32
    return %c0_i32, %c0_i32_0 : i32, i32
  }
  func.func @transform_3(%arg0: i32, %arg1: i32) -> (i32, i32) {
    %c0_i32 = arith.constant 0 : i32
    %c0_i32_0 = arith.constant 0 : i32
    %c0_i32_1 = arith.constant 0 : i32
    return %c0_i32, %c0_i32_0 : i32, i32
  }
  func.func @transform_4(%arg0: i32, %arg1: i32) -> (i32, i32, i32) {
    %c0_i32 = arith.constant 0 : i32
    %c0_i32_0 = arith.constant 0 : i32
    return %arg0, %arg1, %c0_i32 : i32, i32, i32
  }
}

</mosaic_0001>

<bundles_post_ra>
// kernel: conv_block_pallas.1
= control target key start
LH: loop header
LB: loop body
LE: loop exit
PB: predicated region body
PF: predicated region fallthrough
CT: control target
= control target key end

     0   :  { %9 = vsyncpa [#allocation4], 0  ;;  %s6369_s0 = inlined_call_operand.hbm [shape: bf16[2,1,18,18,4], index: 0, kind: input, shape index: {}]   ;;  %s6370_s1 = inlined_call_operand.hbm [shape: bf16[128,128], index: 1, kind: input, shape index: {}]   ;;  %s6371_s2 = inlined_call_operand.hbm [shape: f32[1,128], index: 2, kind: input, shape index: {}]   ;;  %s6372_s3 = inlined_call_operand.hbm [shape: f32[1,128], index: 3, kind: input, shape index: {}]   ;;  %s6373_s4 = inlined_call_operand.hbm [shape: bf16[2,256,128], index: 4, kind: output, shape index: {}]  }
   0x1   :  { %11 = vsyncpa [#allocation4 + $0x1], 0 }
   0x2   :  { %12 = vsyncpa [#allocation7], 0 }
   0x3   :  { %13 = vsyncpa [#allocation10], 0 }
   0x4   :  { %14 = vsyncpa [#allocation5], 0 }
   0x5   :  { %16 = vsyncpa [#allocation5 + $0x1], 0  ;;  %s5326_s15 = smov 0   ;;  %s5328_s16 = smov 0  }
   0x6   :  { %s5330_s17 = smov 0   ;;  %s5332_s18 = smov 0  }
   0x7   :  { %s5334_s19 = smov 0   ;;  %s5336_s20 = smov 0  }
   0x8 LB: > { %s3790_s21 = sadd.s32 4294967295, %s5282_s20   ;;  %s3791_s22 = sadd.s32 4294967294, %s5282_s20   ;;  %s5282_s20 = sphi %s5336_s20, %s22_s20   ;;  %s5278_s19 = sphi %s5334_s19, %s6402_s19   ;;  %s5274_s18 = sphi %s5332_s18, %s6401_s18   ;;  %s5270_s17 = sphi %s5330_s17, %s6400_s17   ;;  %s5266_s16 = sphi %s5328_s16, %s6399_s16   ;;  %s5262_s15 = sphi %s5326_s15, %s6398_s15  }
   0x9   : > { %p54_p0 = scmp.ne.s32.totalorder %s5266_s16, %s5262_s15  ;;  %p5360_p1 = scmp.eq.s32.totalorder %s3790_s21, 0 }
   0xa   : > { %p5364_p2 = scmp.eq.s32.totalorder %s3790_s21, 1  ;;  %p149_p3 = scmp.eq.s32.totalorder %s3791_s22, 1 }
   0xb   : > { %s6380_s23 = scalar_select %p5360_p1, 1, 0 }
   0xc   : > { %s6381_s24 = scalar_select %p5364_p2, 1, 0 }
   0xd   : > { %p5370_p4 = por %p5360_p1, %p54_p0  ;;  %p3792_p5 = scmp.ge.s32.totalorder %s5282_s20, 1 }
   0xe   : > { %p5375_p6 = por %p149_p3, %p54_p0  ;;  %p156_p7 = scmp.lt.s32.totalorder %s5282_s20, 3 }
   0xf   : > { %s6382_s25 = scalar_select %p5370_p4, 1, 0 }
  0x10   : > { %s6383_s26 = scalar_select %p5375_p6, 1, 0 }
  0x11   : > { %p5380_p8 = pnand %p3792_p5, %p156_p7  ;;  %s5284_s28 = smov [#allocation6]  }
  0x12   : > { %6384 = sst [smem:[#allocation16_spill]] %s6383_s26  ;;  %s168_s29 = sshll.u32 %s5284_s28, 4  ;;  %s5384_s29 = int_to_ptr.vmem [resolvable:$true] %s168_s29 }
  0x13   : > { %s6385_s27 = scalar_select %p5380_p8, 1, 0 }
  0x14   : > { %p4613_p9 = pneg %p5380_p8  ;;  %s5285_s5 = smov [#allocation8]  }
  0x15   : > { %s182_s6 = sshll.u32 %s5285_s5, 4  ;;  %s5286_s7 = smov [#allocation9]   ;;  %s5395_s6 = int_to_ptr.vmem [resolvable:$true] %s182_s6 }
  0x16   : > { %p5391_p11 = pnand %p4613_p9, %p5360_p1  ;;  %s5397_s8 = sshll.u32 %s5286_s7, 4  ;;  %s194_s8 = int_to_ptr.vmem [resolvable:$true] %s5397_s8 }
  0x17   : > { %s5078_s11 = scalar_lea.hbm %s6370_s1, 1024 }
  0x18   : > { %p5079_p12 = scmp.ne.s32.totalorder %s6370_s1, %s5078_s11  ;;  %p5407_p13 = pneg %p5391_p11 }
  0x19   : > { %p5085_p5 = scmp.lt.u32.totalorder %s5078_s11, %s6370_s1 }
  0x1a   : > { %p5081_p0 = pnand %p5407_p13, %p5079_p12 }
  0x1c   : > { %p5082_p3 = pneg %p5081_p0 }
  0x1e   : > { %p5087_p7 = pnand %p5085_p5, %p5082_p3 }
  0x20   : > { %5090 = shalt.err (!%p5087_p7)
}
  0x21   : > { %s5091_s28 = scalar_lea.vmem %s5384_s29, 1024  ;;  %p5099_p1 = scmp.lt.s32.totalorder %s5384_s29, %s5384_s29 }
  0x22   : > { %p5092_p9 = scmp.ne.s32.totalorder %s5384_s29, %s5091_s28  ;;  %p5100_p4 = scmp.lt.s32.totalorder %s5091_s28, %s5091_s28 }
  0x24   : > { %p5094_p10 = pnand %p5092_p9, %p5407_p13  ;;  %p5101_p12 = por %p5100_p4, %p5099_p1 }
  0x26   : > { %p5095_p6 = pneg %p5094_p10 }
  0x28   : > { %p5102_p0 = pnand %p5101_p12, %p5095_p6 }
  0x2a   : > { %5105 = shalt.err (!%p5102_p0)
}
  0x2b   : > { %s6379_s5 = smov 64   ;;  %s5288_s7 = smov 4  }
  0x2c   : > { %4616 = dma.hbm_to_vmem [thread:$0]  (!%p5391_p11), %s6370_s1, 1024, %s5384_s29, [#allocation7], %s6379_s5, %s6379_s5, %s5288_s7  }
  0x2d   : > { %s5106_s13 = scalar_lea.hbm %s6371_s2, 16 }
  0x2e   : > { %p5107_p1 = scmp.ne.s32.totalorder %s6371_s2, %s5106_s13  ;;  %p5113_p10 = scmp.lt.u32.totalorder %s5106_s13, %s6371_s2 }
  0x30   : > { %p5109_p4 = pnand %p5107_p1, %p5407_p13 }
  0x32   : > { %p5110_p6 = pneg %p5109_p4 }
  0x34   : > { %p5115_p3 = pnand %p5113_p10, %p5110_p6 }
  0x36   : > { %5118 = shalt.err (!%p5115_p3)
}
  0x37   : > { %s5119_s29 = scalar_lea.vmem %s5395_s6, 16  ;;  %s5126_s9 = scalar_lea.vmem %s5395_s6, 32 }
  0x38   : > { %p5120_p5 = scmp.ne.s32.totalorder %s5395_s6, %s5119_s29  ;;  %p5127_p12 = scmp.lt.s32.totalorder %s5395_s6, %s5395_s6 }
  0x39   : > { %p5128_p0 = scmp.lt.s32.totalorder %s5126_s9, %s5119_s29 }
  0x3a   : > { %p5122_p7 = pnand %p5120_p5, %p5407_p13 }
  0x3b   : > { %p5129_p1 = por %p5128_p0, %p5127_p12 }
  0x3c   : > { %p5123_p9 = pneg %p5122_p7 }
  0x3e   : > { %p5130_p4 = pnand %p5129_p1, %p5123_p9 }
  0x40   : > { %5133 = shalt.err (!%p5130_p4)
}
  0x41   : > { %4619 = dma.hbm_to_vmem [thread:$0]  (!%p5391_p11), %s6371_s2, 16, %s5395_s6, [#allocation7]  }
  0x42   : > { %s5134_s13 = scalar_lea.hbm %s6372_s3, 16 }
  0x43   : > { %p5135_p6 = scmp.ne.s32.totalorder %s6372_s3, %s5134_s13  ;;  %p5141_p5 = scmp.lt.u32.totalorder %s5134_s13, %s6372_s3 }
  0x45   : > { %p5137_p10 = pnand %p5135_p6, %p5407_p13 }
  0x47   : > { %p5138_p3 = pneg %p5137_p10 }
  0x49   : > { %p5143_p7 = pnand %p5141_p5, %p5138_p3 }
  0x4b   : > { %5146 = shalt.err (!%p5143_p7)
}
  0x4c   : > { %s5147_s9 = scalar_lea.vmem %s194_s8, 16  ;;  %s5154_s6 = scalar_lea.vmem %s194_s8, 32 }
  0x4d   : > { %p5148_p9 = scmp.ne.s32.totalorder %s194_s8, %s5147_s9  ;;  %p5155_p1 = scmp.lt.s32.totalorder %s194_s8, %s194_s8 }
  0x4e   : > { %p5156_p4 = scmp.lt.s32.totalorder %s5154_s6, %s5147_s9 }
  0x4f   : > { %p5150_p12 = pnand %p5148_p9, %p5407_p13 }
  0x50   : > { %p5157_p8 = por %p5156_p4, %p5155_p1 }
  0x51   : > { %p5151_p0 = pneg %p5150_p12 }
  0x53   : > { %p5158_p2 = pnand %p5157_p8, %p5151_p0 }
  0x55   : > { %5161 = shalt.err (!%p5158_p2)
}
  0x56   : > { %4622 = dma.hbm_to_vmem [thread:$0]  (!%p5391_p11), %s6372_s3, 16, %s194_s8, [#allocation10]  }
  0x57   : > { %s41_s14 = sadd.s32 1, %s5270_s17  ;;  %s34_s11 = sadd.s32 1, %s5278_s19 }
  0x58   : > { %p48_p2 = scmp.ne.s32.totalorder %s5270_s17, %s5266_s16  ;;  %p36_p8 = scmp.ge.s32.totalorder %s34_s11, 2 }
  0x59   : > { %p49_p13 = scmp.eq.s32.totalorder %s5282_s20, 0  ;;  %p6388_p6 = scmp.ne.s32.totalorder %s6381_s24, 0 }
  0x5a   : > { %p4634_p3 = scmp.lt.s32.totalorder %s5282_s20, 2  ;;  %s6404_s11 = smov (%p36_p8, %s34_s11), 0 }
  0x5b   : > { %p5481_p10 = por %p6388_p6, %p48_p2  ;;  %p50_p5 = por %p49_p13, %p48_p2 }
  0x5c   : > { %s204_s12 = sand.u32 1, %s5270_s17   ;;  %s38_s13 = ssub.s32 %s5278_s19, %s6404_s11 }
  0x5d   : > { %p39_p7 = scmp.eq.s32.totalorder %s38_s13, 0  ;;  %s4594_s8 = smul.u32 216, %s204_s12 }
  0x5e   : > { %s4595_s21 = smul.u32 3456, %s5278_s19  ;;  %p5492_p11 = pnand %p4634_p3, %p50_p5 }
  0x5f   : > { %s5497_s24 = scalar_select %p39_p7, %s5270_s17, %s41_s14  }
  0x60   : > { %s5502_s9 = scalar_lea.hbm %s6369_s0, %s4595_s21  ;;  %s208_s6 = scalar_lea.vmem [#allocation3], %s4594_s8 }
  0x61   : > { %s215_s26 = sshll.u32 %s208_s6, 4  ;;  %s5506_s10 = scalar_lea.sflag [#allocation4], %s204_s12  ;;  %s5504_s26 = int_to_ptr.vmem [resolvable:$true] %s215_s26 }
  0x62   : > { %s5162_s13 = scalar_lea.hbm %s5502_s9, 3456  ;;  %p5164_p12 = pneg %p5492_p11 }
  0x63   : > { %p5163_p9 = scmp.ne.s32.totalorder %s5502_s9, %s5162_s13  ;;  %s5167_s28 = scalar_lea.hbm %s6369_s0, 6912 }
  0x64   : > { %p5168_p4 = scmp.lt.u32.totalorder %s5502_s9, %s6369_s0  ;;  %p5169_p2 = scmp.lt.u32.totalorder %s5167_s28, %s5162_s13 }
  0x65   : > { %p5165_p0 = pnand %p5164_p12, %p5163_p9  ;;  %p5171_p13 = scmp.lt.u32.totalorder %s5162_s13, %s5502_s9 }
  0x66   : > { %p5170_p8 = por %p5169_p2, %p5168_p4 }
  0x67   : > { %p5166_p1 = pneg %p5165_p0 }
  0x68   : > { %p5172_p6 = por %p5171_p13, %p5170_p8 }
  0x6a   : > { %p5173_p3 = pnand %p5172_p6, %p5166_p1 }
  0x6c   : > { %5176 = shalt.err (!%p5173_p3)
}
  0x6d   : > { %s5177_s12 = scalar_lea.vmem %s5504_s26, 3456  ;;  %s5289_s8 = smov [#allocation3]  }
  0x6e   : > { %p5178_p5 = scmp.ne.s32.totalorder %s5504_s26, %s5177_s12  ;;  %s5182_s6 = sshll.u32 %s5289_s8, 4  ;;  %s5183_s6 = int_to_ptr.vmem [resolvable:$false] %s5182_s6 }
  0x6f   : > { %s5184_s5 = scalar_lea.vmem %s5183_s6, 6912  ;;  %p5185_p0 = scmp.lt.s32.totalorder %s5504_s26, %s5183_s6 }
  0x70   : > { %p5180_p7 = pnand %p5178_p5, %p5164_p12  ;;  %p5186_p4 = scmp.lt.s32.totalorder %s5184_s5, %s5177_s12 }
  0x72   : > { %p5181_p9 = pneg %p5180_p7  ;;  %p5187_p2 = por %p5186_p4, %p5185_p0 }
  0x74   : > { %p5188_p8 = pnand %p5187_p2, %p5181_p9 }
  0x76   : > { %5191 = shalt.err (!%p5188_p8)
}
  0x77   : > { %s6391_s13 = smov 64   ;;  %p6392_p12 = scmp.ne.s32.totalorder %s6385_s27, 0 }
  0x78   : > { %4626 = dma.hbm_to_vmem [thread:$0]  (!%p5492_p11), %s5502_s9, 3456, %s5504_s26, %s5506_s10, %s6391_s13, %s6391_s13, %s5288_s7  }
  0x79   : > { %227 = sbr.rel (%p6392_p12) target bundleno = 778 (0x30a), region = 36  ;;  %s5540_s14 = sand.u32 (!%p6392_p12), 1, %s5266_s16  }
  0x7a   : > { %s4596_s21 = smul.u32 (!%p6392_p12), 216, %s5540_s14  ;;  %s230_s28 = scalar_lea.sflag (!%p6392_p12), [#allocation4], %s5540_s14 }
  0x7b   : > { %p6393_p1 = scmp.ne.s32.totalorder (!%p6392_p12), %s6382_s25, 0 }
  0x7c   : > { %s5544_s29 = scalar_lea.vmem (!%p6392_p12), [#allocation3], %s4596_s21 }
  0x80   : > { %5245 = dma.done.wait (%p6393_p1), %s230_s28, 3456  }
  0x81   : > { %5247 = vsyncadd (%p6393_p1), %s230_s28, 4294963840  ;;  %p6394_p11 = scmp.ne.s32.totalorder %s6380_s23, 0 }
  0x83   : > { %5249 = dma.done.wait (%p6394_p11), [#allocation7], 1040  }
  0x84   : > { %5251 = vsyncadd (%p6394_p11), [#allocation7], 4294966256 }
  0x85   : > { %5253 = dma.done.wait (%p6394_p11), [#allocation10], 16  }
  0x86   : > { %5255 = vsyncadd (%p6394_p11), [#allocation10], 4294967280  ;;  %vm1044_vm0 = vcmask 1046528   ;;  %v4702_v0 = vld [vmem:[%s5544_s29 + $0x6c] sm:$0xff]   ;;  %s5290_s25 = smov 12   ;;  %s5291_s23 = smov 8  }
  0x87   : > { %v4703_v1 = vld [vmem:[%s5544_s29 + $0xc] sm:$0xff]   ;;  %1287 = vrot.lane.b32.xlu1 %v4702_v0, %s5290_s25  ;;  %v4704_v2 = vld [vmem:[%s5544_s29 + $0x60] sm:$0xfe]   ;;  %v4705_v3 = vld [vmem:[%s5544_s29 + $0x68] ss:$0 sps:$4 sm:$0x11]  }
  0x88   : > { %1271 = vrot.lane.b32.xlu0 %v4703_v1, %s5290_s25  ;;  %v4712_v4 = vld [vmem:[%s5544_s29 + $0xc] sm:$0xff]   ;;  %v1069_v5 = vrot.slane %v4704_v2, 1  ;;  %v1070_v6 = vrot.slane %v4705_v3, 1  ;;  %v4706_v7 = vld [vmem:[%s5544_s29] sm:$0xfe]   ;;  %s5292_s27 = smov 4  }
  0x89   : > { %v4707_v8 = vld [vmem:[%s5544_s29 + $0x8] ss:$0 sps:$4 sm:$0x11]   ;;  %v624_v9 = vshrl.u32 %v4712_v4, 16  ;;  %v1045_v11 = vrot.slane %v4706_v7, 1  ;;  %v626_v13 = vshll.u32 %v4712_v4, 16 }
  0x8a   : > { %v1071_v10 = vsel %vm1044_vm0, %v1069_v5, %v1070_v6  ;;  %v4708_v12 = vld [vmem:[%s5544_s29 + $0x6c] sm:$0xfe]   ;;  %vm610_vm1 = vsmask.f32 7424  ;;  %v1046_v14 = vrot.slane %v4707_v8, 1  ;;  %v4714_v26 = vld [vmem:[%s5544_s29] sm:$0xff]  }
  0x8b   : > { %1109 = vrot.lane.b32.xlu1 %v1071_v10, %s5291_s23  ;;  %v4709_v15 = vld [vmem:[%s5544_s29 + $0x74] ss:$0 sps:$4 sm:$0x11]   ;;  %v1072_v16 = vrot.slane %v4708_v12, 1  ;;  %v628_v17 = vrot.slane %v626_v13, 1  ;;  %v612_v31 = vshrl.u32 %v4714_v26, 16 }
  0x8c   : > { %v1047_v18 = vsel %vm1044_vm0, %v1045_v11, %v1046_v14  ;;  %v1073_v19 = vrot.slane %v4709_v15, 1  ;;  %v4710_v20 = vld [vmem:[%s5544_s29 + $0xc] sm:$0xfe]   ;;  %v4711_v21 = vld [vmem:[%s5544_s29 + $0x14] ss:$0 sps:$4 sm:$0x11]  }
  0x8d   : > { %1093 = vrot.lane.b32.xlu0 %v1047_v18, %s5291_s23  ;;  %v1048_v23 = vrot.slane %v4710_v20, 1  ;;  %v1049_v24 = vrot.slane %v4711_v21, 1  ;;  %v4713_v25 = vld [vmem:[%s5544_s29 + $0x14] ss:$0 sps:$4 sm:$0x11]   ;;  %v629_v27 = vor.u32 %v628_v17, %v624_v9  ;;  %v614_v32 = vshll.u32 %v4714_v26, 16 }
  0x8e   : > { %v1074_v22 = vsel %vm1044_vm0, %v1072_v16, %v1073_v19  ;;  %v631_v29 = vshll.u32 %v4713_v25, 16  ;;  %v4715_v30 = vld [vmem:[%s5544_s29 + $0x8] ss:$0 sps:$4 sm:$0x11]   ;;  %v4716_v36 = vld [vmem:[%s5544_s29 + $0x6c] sm:$0xff]   ;;  %v4718_v38 = vld [vmem:[%s5544_s29 + $0x60] sm:$0xff]  }
  0x8f   : > { %1111 = vrot.lane.b32.xlu1 %v1074_v22, %s5291_s23  ;;  %v1050_v28 = vsel %vm1044_vm0, %v1048_v23, %v1049_v24  ;;  %v616_v34 = vrot.slane %v614_v32, 1  ;;  %v619_v35 = vshll.u32 %v4715_v30, 16  ;;  %v4717_v37 = vld [vmem:[%s5544_s29 + $0x74] ss:$0 sps:$4 sm:$0x11]   ;;  %v720_v42 = vshrl.u32 %v4716_v36, 16 }
  0x90   : > { %v633_v33 = vrot.slane %v631_v29, 1  ;;  %v722_v43 = vshll.u32 %v4716_v36, 16  ;;  %v727_v44 = vshll.u32 %v4717_v37, 16  ;;  %v4719_v45 = vld [vmem:[%s5544_s29 + $0x68] ss:$0 sps:$4 sm:$0x11]  }
  0x91   : > { %1095 = vrot.lane.b32.xlu0 %v1050_v28, %s5291_s23  ;;  %v617_v40 = vor.u32 %v616_v34, %v612_v31  ;;  %v621_v41 = vrot.slane %v619_v35, 1  ;;  %v708_v47 = vshrl.u32 %v4718_v38, 16  ;;  %v710_v48 = vshll.u32 %v4718_v38, 16  ;;  %v4722_v53 = vld [vmem:[%s5544_s29 + $0x6c] sm:$0xff]   ;;  %v4720_v58 = vld [vmem:[%s5544_s29 + $0x78] sm:$0xff]   ;;  %s5293_s7 = smov 16  }
  0x92   : > { %v634_v39 = vsel %vm610_vm1, %v629_v27, %v633_v33  ;;  %v724_v49 = vrot.slane %v722_v43, 1  ;;  %v729_v50 = vrot.slane %v727_v44, 1  ;;  %v715_v51 = vshll.u32 %v4719_v45, 16  ;;  %v4723_v56 = vld [vmem:[%s5544_s29 + $0x74] ss:$0 sps:$4 sm:$0x11]  }
  0x93   : > { %805 = vrot.lane.b32.xlu1 %v634_v39, %s5292_s27  ;;  %v622_v46 = vsel %vm610_vm1, %v617_v40, %v621_v41  ;;  %v712_v52 = vrot.slane %v710_v48, 1  ;;  %v1609_v59 = vshrl.u32 %v4722_v53, 16  ;;  %v1611_v60 = vshll.u32 %v4722_v53, 16  ;;  %v4721_v62 = vld [vmem:[%s5544_s29 + $0x18] sm:$0xff]   ;;  %v4724_v0 = vld [vmem:[%s5544_s29 + $0xc] sm:$0xff]   ;;  %s5294_s22 = smov 20  }
  0x94   : > { %v725_v54 = vor.u32 %v724_v49, %v720_v42  ;;  %v717_v55 = vrot.slane %v715_v51, 1  ;;  %v1616_v63 = vshll.u32 %v4723_v56, 16  ;;  %v4725_v3 = vld [vmem:[%s5544_s29 + $0x14] ss:$0 sps:$4 sm:$0x11]   ;;  %v1513_v5 = vshrl.u32 %v4724_v0, 16 }
  0x95   : > { %803 = vrot.lane.b32.xlu0 %v622_v46, %s5292_s27  ;;  %v713_v57 = vor.u32 %v712_v52, %v708_v47  ;;  %v1613_v2 = vrot.slane %v1611_v60, 1  ;;  %v1515_v6 = vshll.u32 %v4724_v0, 16  ;;  %v4726_v7 = vld [vmem:[%s5544_s29 + $0x78] sm:$0xff]   ;;  %v1520_v9 = vshll.u32 %v4725_v3, 16  ;;  %v4730_v28 = vld [vmem:[%s5544_s29 + $0x6c] sm:$0xfe]  }
  0x96   : > { %v730_v61 = vsel %vm610_vm1, %v725_v54, %v729_v50  ;;  %v1618_v4 = vrot.slane %v1616_v63, 1  ;;  %v4727_v10 = vld [vmem:[%s5544_s29 + $0x80] ss:$0 sps:$4 sm:$0x11]   ;;  %v1621_v12 = vshrl.u32 %v4726_v7, 16  ;;  %v1623_v13 = vshll.u32 %v4726_v7, 16 }
  0x97   : > { %821 = vrot.lane.b32.xlu1 %v730_v61, %s5292_s27  ;;  %v718_v1 = vsel %vm610_vm1, %v713_v57, %v717_v55  ;;  %v1614_v8 = vor.u32 %v1613_v2, %v1609_v59  ;;  %v1517_v11 = vrot.slane %v1515_v6, 1  ;;  %v4728_v14 = vld [vmem:[%s5544_s29 + $0x18] sm:$0xff]   ;;  %v1522_v16 = vrot.slane %v1520_v9, 1  ;;  %v4729_v20 = vld [vmem:[%s5544_s29 + $0x20] ss:$0 sps:$4 sm:$0x11]  }
  0x98   : > { %v1628_v17 = vshll.u32 %v4727_v10, 16  ;;  %v1625_v19 = vrot.slane %v1623_v13, 1  ;;  %v1525_v21 = vshrl.u32 %v4728_v14, 16  ;;  %v1527_v22 = vshll.u32 %v4728_v14, 16  ;;  %v4732_v34 = vld [vmem:[%s5544_s29 + $0xc] sm:$0xfe]  }
  0x99   : > { %819 = vrot.lane.b32.xlu0 %v718_v1, %s5292_s27  ;;  %v1619_v15 = vsel %vm610_vm1, %v1614_v8, %v1618_v4  ;;  %v1518_v18 = vor.u32 %v1517_v11, %v1513_v5  ;;  %v1532_v27 = vshll.u32 %v4729_v20, 16  ;;  %v4731_v29 = vld [vmem:[%s5544_s29 + $0x74] ss:$0 sps:$4 sm:$0x11]   ;;  %v1969_v33 = vrot.slane %v4730_v28, 1  ;;  %v4742_v49 = vld [vmem:[%s5544_s29 + $0x78] sm:$0xff]  }
  0x9a   : > { %v1630_v23 = vrot.slane %v1628_v17, 1  ;;  %v1626_v25 = vor.u32 %v1625_v19, %v1621_v12  ;;  %v1529_v26 = vrot.slane %v1527_v22, 1  ;;  %v1970_v35 = vrot.slane %v4731_v29, 1  ;;  %v4733_v36 = vld [vmem:[%s5544_s29 + $0x14] ss:$0 sps:$4 sm:$0x11]  }
  0x9b   : > { %1289 = vrot.lane.b32.xlu1 %v4720_v58, %s5290_s25  ;;  %v1523_v24 = vsel %vm610_vm1, %v1518_v18, %v1522_v16  ;;  %v1534_v32 = vrot.slane %v1532_v27, 1  ;;  %v1945_v38 = vrot.slane %v4732_v34, 1  ;;  %v1946_v39 = vrot.slane %v4733_v36, 1  ;;  %v4734_v40 = vld [vmem:[%s5544_s29 + $0x78] sm:$0xfe]   ;;  %v4741_v1 = vld [vmem:[%s5544_s29 + $0x24] sm:$0xff]  }
  0x9c   : > { %v1631_v30 = vsel %vm610_vm1, %v1626_v25, %v1630_v23  ;;  %v1530_v31 = vor.u32 %v1529_v26, %v1525_v21  ;;  %v4735_v41 = vld [vmem:[%s5544_s29 + $0x80] ss:$0 sps:$4 sm:$0x11]   ;;  %v1971_v42 = vsel %vm1044_vm0, %v1969_v33, %v1970_v35  ;;  %v1972_v44 = vrot.slane %v4734_v40, 1  ;;  %v4736_v46 = vld [vmem:[%s5544_s29 + $0x18] sm:$0xfe]  }
  0x9d   : > { %1273 = vrot.lane.b32.xlu0 %v4721_v62, %s5290_s25  ;;  %v1947_v43 = vsel %vm1044_vm0, %v1945_v38, %v1946_v39  ;;  %v1973_v45 = vrot.slane %v4735_v41, 1  ;;  %v4737_v47 = vld [vmem:[%s5544_s29 + $0x20] ss:$0 sps:$4 sm:$0x11]   ;;  %v1948_v48 = vrot.slane %v4736_v46, 1  ;;  %v4744_v52 = vld [vmem:[%s5544_s29 + $0x18] sm:$0xff]  }
  0x9e   : > { %v1535_v37 = vsel %vm610_vm1, %v1530_v31, %v1534_v32  ;;  %v1949_v51 = vrot.slane %v4737_v47, 1  ;;  %v4738_v53 = vld [vmem:[%s5544_s29 + $0x78] sm:$0xff]   ;;  %v2509_v56 = vshrl.u32 %v4742_v49, 16  ;;  %v2511_v57 = vshll.u32 %v4742_v49, 16  ;;  %v4740_v62 = vld [vmem:[%s5544_s29 + $0x84] sm:$0xff]   ;;  %s5295_s9 = smov 24  }
  0x9f   : > { %1720 = vrot.lane.b32.xlu1 %v1619_v15, %s5293_s7  ;;  %v1974_v50 = vsel %vm1044_vm0, %v1972_v44, %v1973_v45  ;;  %v4739_v55 = vld [vmem:[%s5544_s29 + $0x18] sm:$0xff]   ;;  %v4743_v58 = vld [vmem:[%s5544_s29 + $0x80] ss:$0 sps:$4 sm:$0x11]   ;;  %v2413_v59 = vshrl.u32 %v4744_v52, 16  ;;  %v2415_v61 = vshll.u32 %v4744_v52, 16 }
  0xa0   : > { %v1950_v54 = vsel %vm1044_vm0, %v1948_v48, %v1949_v51  ;;  %v2513_v60 = vrot.slane %v2511_v57, 1  ;;  %v2516_v63 = vshll.u32 %v4743_v58, 16  ;;  %v4745_v0 = vld [vmem:[%s5544_s29 + $0x20] ss:$0 sps:$4 sm:$0x11]   ;;  %v4746_v3 = vld [vmem:[%s5544_s29 + $0x84] sm:$0xff]  }
  0xa1   : > { %1704 = vrot.lane.b32.xlu0 %v1523_v24, %s5293_s7  ;;  %v2417_v2 = vrot.slane %v2415_v61, 1  ;;  %v2420_v5 = vshll.u32 %v4745_v0, 16  ;;  %v4747_v6 = vld [vmem:[%s5544_s29 + $0x8c] ss:$0 sps:$4 sm:$0x11]   ;;  %v4748_v7 = vld [vmem:[%s5544_s29 + $0x24] sm:$0xff]  }
  0xa2   : > { %v2518_v4 = vrot.slane %v2516_v63, 1  ;;  %v2514_v8 = vor.u32 %v2513_v60, %v2509_v56  ;;  %v2521_v9 = vshrl.u32 %v4746_v3, 16  ;;  %v2523_v10 = vshll.u32 %v4746_v3, 16  ;;  %v4754_v14 = vld [vmem:[%s5544_s29 + $0x78] sm:$0xff]   ;;  %s5296_s26 = smov 28   ;;  %v4762_v52 = vld [vmem:[%s5544_s29 + $0x84] sm:$0xff]  }
  0xa3   : > { %1722 = vrot.lane.b32.xlu1 %v1631_v30, %s5293_s7  ;;  %v2418_v11 = vor.u32 %v2417_v2, %v2413_v59  ;;  %v2422_v12 = vrot.slane %v2420_v5, 1  ;;  %v2528_v13 = vshll.u32 %v4747_v6, 16  ;;  %v4749_v16 = vld [vmem:[%s5544_s29 + $0x2c] ss:$0 sps:$4 sm:$0x11]   ;;  %v2425_v17 = vshrl.u32 %v4748_v7, 16 }
  0xa4   : > { %v2525_v15 = vrot.slane %v2523_v10, 1  ;;  %v2427_v18 = vshll.u32 %v4748_v7, 16  ;;  %v732_v20 = vshrl.u32 %v4754_v14, 16  ;;  %v2519_v21 = vsel %vm610_vm1, %v2514_v8, %v2518_v4  ;;  %v4750_v25 = vld [vmem:[%s5544_s29 + $0x78] sm:$0xfe]   ;;  %s5297_s10 = smov 32  }
  0xa5   : > { %1706 = vrot.lane.b32.xlu0 %v1535_v37, %s5293_s7  ;;  %v2530_v19 = vrot.slane %v2528_v13, 1  ;;  %v2432_v24 = vshll.u32 %v4749_v16, 16  ;;  %v2423_v26 = vsel %vm610_vm1, %v2418_v11, %v2422_v12  ;;  %v4751_v27 = vld [vmem:[%s5544_s29 + $0x80] ss:$0 sps:$4 sm:$0x11]   ;;  %v734_v28 = vshll.u32 %v4754_v14, 16 }
  0xa6   : > { %v2526_v22 = vor.u32 %v2525_v15, %v2521_v9  ;;  %v2429_v23 = vrot.slane %v2427_v18, 1  ;;  %v2869_v31 = vrot.slane %v4750_v25, 1  ;;  %v4756_v32 = vld [vmem:[%s5544_s29 + $0x18] sm:$0xff]   ;;  %v2870_v33 = vrot.slane %v4751_v27, 1  ;;  %v4758_v51 = vld [vmem:[%s5544_s29 + $0x84] sm:$0xfe]  }
  0xa7   : > { %2009 = vrot.lane.b32.xlu1 %v1971_v42, %s5294_s22  ;;  %v2434_v30 = vrot.slane %v2432_v24, 1  ;;  %v4752_v34 = vld [vmem:[%s5544_s29 + $0x18] sm:$0xfe]   ;;  %v4753_v35 = vld [vmem:[%s5544_s29 + $0x20] ss:$0 sps:$4 sm:$0x11]  }
  0xa8   : > { %v2430_v29 = vor.u32 %v2429_v23, %v2425_v17  ;;  %v2531_v36 = vsel %vm610_vm1, %v2526_v22, %v2530_v19  ;;  %v2845_v38 = vrot.slane %v4752_v34, 1  ;;  %v2846_v39 = vrot.slane %v4753_v35, 1  ;;  %v4755_v40 = vld [vmem:[%s5544_s29 + $0x80] ss:$0 sps:$4 sm:$0x11]   ;;  %v4764_v57 = vld [vmem:[%s5544_s29 + $0x24] sm:$0xff]  }
  0xa9   : > { %1993 = vrot.lane.b32.xlu0 %v1947_v43, %s5294_s22  ;;  %v736_v41 = vrot.slane %v734_v28, 1  ;;  %v739_v42 = vshll.u32 %v4755_v40, 16  ;;  %v4757_v43 = vld [vmem:[%s5544_s29 + $0x20] ss:$0 sps:$4 sm:$0x11]   ;;  %v2871_v44 = vsel %vm1044_vm0, %v2869_v31, %v2870_v33  ;;  %v636_v46 = vshrl.u32 %v4756_v32, 16 }
  0xaa   : > { %v2435_v37 = vsel %vm610_vm1, %v2430_v29, %v2434_v30  ;;  %v638_v47 = vshll.u32 %v4756_v32, 16  ;;  %v2847_v48 = vsel %vm1044_vm0, %v2845_v38, %v2846_v39  ;;  %v2872_v56 = vrot.slane %v4758_v51, 1  ;;  %v4760_v61 = vld [vmem:[%s5544_s29 + $0x24] sm:$0xfe]   ;;  %v4766_v16 = vld [vmem:[%s5544_s29 + $0x78] sm:$0xfe]  }
  0xab   : > { %2011 = vrot.lane.b32.xlu1 %v1974_v50, %s5294_s22  ;;  %v737_v45 = vor.u32 %v736_v41, %v732_v20  ;;  %v741_v49 = vrot.slane %v739_v42, 1  ;;  %v643_v50 = vshll.u32 %v4757_v43, 16  ;;  %v2848_v0 = vrot.slane %v4760_v61, 1  ;;  %v4763_v2 = vld [vmem:[%s5544_s29 + $0x8c] ss:$0 sps:$4 sm:$0x11]  }
  0xac   : > { %v744_v3 = vshrl.u32 %v4762_v52, 16  ;;  %v746_v4 = vshll.u32 %v4762_v52, 16  ;;  %v751_v6 = vshll.u32 %v4763_v2, 16  ;;  %v4765_v7 = vld [vmem:[%s5544_s29 + $0x2c] ss:$0 sps:$4 sm:$0x11]  }
  0xad   : > { %1995 = vrot.lane.b32.xlu0 %v1950_v54, %s5294_s22  ;;  %v4759_v54 = vld [vmem:[%s5544_s29 + $0x8c] ss:$0 sps:$4 sm:$0x11]   ;;  %v742_v58 = vsel %vm610_vm1, %v737_v45, %v741_v49  ;;  %v648_v10 = vshrl.u32 %v4764_v57, 16  ;;  %v650_v11 = vshll.u32 %v4764_v57, 16  ;;  %v655_v13 = vshll.u32 %v4765_v7, 16 }
  0xae   : > { %v2873_v60 = vrot.slane %v4759_v54, 1  ;;  %v748_v9 = vrot.slane %v746_v4, 1  ;;  %v753_v12 = vrot.slane %v751_v6, 1  ;;  %v4767_v17 = vld [vmem:[%s5544_s29 + $0x80] ss:$0 sps:$4 sm:$0x11]  }
  0xaf   : > { %2187 = vrot.lane.b32.xlu1 %v4738_v53, %s5295_s9  ;;  %v640_v53 = vrot.slane %v638_v47, 1  ;;  %v652_v15 = vrot.slane %v650_v11, 1  ;;  %v657_v18 = vrot.slane %v655_v13, 1  ;;  %v1076_v22 = vrot.slane %v4767_v17, 1  ;;  %v4768_v23 = vld [vmem:[%s5544_s29 + $0x18] sm:$0xfe]  }
  0xb0   : > { %v2874_v5 = vsel %vm1044_vm0, %v2872_v56, %v2873_v60  ;;  %v749_v14 = vor.u32 %v748_v9, %v744_v3  ;;  %v4769_v24 = vld [vmem:[%s5544_s29 + $0x20] ss:$0 sps:$4 sm:$0x11]   ;;  %v4778_v27 = vld [vmem:[%s5544_s29 + $0x84] sm:$0xff]   ;;  %v4777_v51 = vld [vmem:[%s5544_s29 + $0x30] sm:$0xff]   ;;  %vm272_vm2 = vcmask 1047840  }
  0xb1   : > { %2171 = vrot.lane.b32.xlu0 %v4739_v55, %s5295_s9  ;;  %v645_v55 = vrot.slane %v643_v50, 1  ;;  %v641_v59 = vor.u32 %v640_v53, %v636_v46  ;;  %v653_v20 = vor.u32 %v652_v15, %v648_v10  ;;  %v1052_v29 = vrot.slane %v4769_v24, 1  ;;  %v4770_v30 = vld [vmem:[%s5544_s29 + $0x84] sm:$0xfe]   ;;  %v4776_v50 = vld [vmem:[%s5544_s29 + $0x90] sm:$0xff]   ;;  %s3802_s12 = sshll.u32 %s5540_s14, 7 }
  0xb2   : > { %v754_v19 = vsel %vm610_vm1, %v749_v14, %v753_v12  ;;  %v4771_v31 = vld [vmem:[%s5544_s29 + $0x8c] ss:$0 sps:$4 sm:$0x11]   ;;  %v1078_v33 = vrot.slane %v4770_v30, 1  ;;  %v4772_v35 = vld [vmem:[%s5544_s29 + $0x24] sm:$0xfe]  }
  0xb3   : > { %2189 = vrot.lane.b32.xlu1 %v4740_v62, %s5295_s9  ;;  %v4761_v62 = vld [vmem:[%s5544_s29 + $0x2c] ss:$0 sps:$4 sm:$0x11]   ;;  %v646_v63 = vsel %vm610_vm1, %v641_v59, %v645_v55  ;;  %v658_v25 = vsel %vm610_vm1, %v653_v20, %v657_v18  ;;  %v1079_v34 = vrot.slane %v4771_v31, 1  ;;  %v1054_v39 = vrot.slane %v4772_v35, 1  ;;  %v4774_v42 = vld [vmem:[%s5544_s29 + $0x84] sm:$0xff]  }
  0xb4   : > { %v1635_v40 = vshll.u32 %v4778_v27, 16  ;;  %v4780_v43 = vld [vmem:[%s5544_s29 + $0x24] sm:$0xff]   ;;  %v4781_v53 = vld [vmem:[%s5544_s29 + $0x2c] ss:$0 sps:$4 sm:$0x11]   ;;  %v4782_v55 = vld [vmem:[%s5544_s29 + $0x90] sm:$0xff]  }
  0xb5   : > { %2173 = vrot.lane.b32.xlu0 %v4741_v1, %s5295_s9  ;;  %v2849_v1 = vrot.slane %v4761_v62, 1  ;;  %v1080_v38 = vsel %vm1044_vm0, %v1078_v33, %v1079_v34  ;;  %v1537_v47 = vshrl.u32 %v4780_v43, 16  ;;  %v1539_v49 = vshll.u32 %v4780_v43, 16  ;;  %v4783_v59 = vld [vmem:[%s5544_s29 + $0x98] ss:$0 sps:$4 sm:$0x11]  }
  0xb6   : > { %v1637_v46 = vrot.slane %v1635_v40, 1  ;;  %v1645_v60 = vshrl.u32 %v4782_v55, 16  ;;  %v1647_v62 = vshll.u32 %v4782_v55, 16  ;;  %v4785_v2 = vld [vmem:[%s5544_s29 + $0x38] ss:$0 sps:$4 sm:$0x11]  }
  0xb7   : > { %2620 = vrot.lane.b32.xlu1 %v2519_v21, %s5296_s26  ;;  %v2850_v8 = vsel %vm1044_vm0, %v2848_v0, %v2849_v1  ;;  %v1075_v21 = vrot.slane %v4766_v16, 1  ;;  %v1541_v54 = vrot.slane %v1539_v49, 1  ;;  %v1652_v1 = vshll.u32 %v4783_v59, 16  ;;  %v4786_v12 = vld [vmem:[%s5544_s29 + $0x84] sm:$0xfe]   ;;  %v4794_v40 = vld [vmem:[%s5544_s29 + $0x90] sm:$0xff]  }
  0xb8   : > { %v1649_v3 = vrot.slane %v1647_v62, 1  ;;  %v4787_v13 = vld [vmem:[%s5544_s29 + $0x8c] ss:$0 sps:$4 sm:$0x11]   ;;  %v1975_v16 = vrot.slane %v4786_v12, 1  ;;  %v4795_v43 = vld [vmem:[%s5544_s29 + $0x30] sm:$0xff]  }
  0xb9   : > { %2604 = vrot.lane.b32.xlu0 %v2423_v26, %s5296_s26  ;;  %v1051_v26 = vrot.slane %v4768_v23, 1  ;;  %v1077_v28 = vsel %vm1044_vm0, %v1075_v21, %v1076_v22  ;;  %v1542_v61 = vor.u32 %v1541_v54, %v1537_v47  ;;  %v1654_v7 = vrot.slane %v1652_v1, 1  ;;  %v4788_v17 = vld [vmem:[%s5544_s29 + $0x24] sm:$0xfe]   ;;  %v4798_v23 = vld [vmem:[%s5544_s29 + $0x90] sm:$0xff]   ;;  %v4802_v49 = vld [vmem:[%s5544_s29 + $0x9c] sm:$0xff]  }
  0xba   : > { %v1650_v10 = vor.u32 %v1649_v3, %v1645_v60  ;;  %v4789_v20 = vld [vmem:[%s5544_s29 + $0x2c] ss:$0 sps:$4 sm:$0x11]   ;;  %v1951_v22 = vrot.slane %v4788_v17, 1  ;;  %v4792_v30 = vld [vmem:[%s5544_s29 + $0x30] sm:$0xfe]  }
  0xbb   : > { %2622 = vrot.lane.b32.xlu1 %v2531_v36, %s5296_s26  ;;  %v1053_v32 = vsel %vm1044_vm0, %v1051_v26, %v1052_v29  ;;  %v4773_v36 = vld [vmem:[%s5544_s29 + $0x2c] ss:$0 sps:$4 sm:$0x11]   ;;  %v1952_v24 = vrot.slane %v4789_v20, 1  ;;  %v2533_v33 = vshrl.u32 %v4798_v23, 16  ;;  %v1954_v34 = vrot.slane %v4792_v30, 1 }
  0xbc   : > { %v1055_v41 = vrot.slane %v4773_v36, 1  ;;  %v1655_v18 = vsel %vm610_vm1, %v1650_v10, %v1654_v7  ;;  %v4791_v26 = vld [vmem:[%s5544_s29 + $0x98] ss:$0 sps:$4 sm:$0x11]   ;;  %v2535_v35 = vshll.u32 %v4798_v23, 16  ;;  %v2547_v55 = vshll.u32 %v4802_v49, 16 }
  0xbd   : > { %2606 = vrot.lane.b32.xlu0 %v2435_v37, %s5296_s26  ;;  %v1633_v37 = vshrl.u32 %v4778_v27, 16  ;;  %v1979_v29 = vrot.slane %v4791_v26, 1  ;;  %v1953_v31 = vsel %vm1044_vm0, %v1951_v22, %v1952_v24  ;;  %v4801_v47 = vld [vmem:[%s5544_s29 + $0x38] ss:$0 sps:$4 sm:$0x11]   ;;  %v2545_v59 = vshrl.u32 %v4802_v49, 16 }
  0xbe   : > { %v1056_v45 = vsel %vm1044_vm0, %v1054_v39, %v1055_v41  ;;  %v2537_v41 = vrot.slane %v2535_v35, 1  ;;  %v4803_v54 = vld [vmem:[%s5544_s29 + $0xa4] ss:$0 sps:$4 sm:$0x11]   ;;  %v4810_v3 = vld [vmem:[%s5544_s29 + $0x90] sm:$0xff]   ;;  %vm417_vm3 = vcmask 31744  }
  0xbf   : > { %2909 = vrot.lane.b32.xlu1 %v2871_v44, %s5297_s10  ;;  %v4775_v44 = vld [vmem:[%s5544_s29 + $0x24] sm:$0xff]   ;;  %v1638_v56 = vor.u32 %v1637_v46, %v1633_v37  ;;  %v4800_v37 = vld [vmem:[%s5544_s29 + $0x30] sm:$0xff]   ;;  %v2552_v60 = vshll.u32 %v4803_v54, 16  ;;  %v4809_v20 = vld [vmem:[%s5544_s29 + $0x38] ss:$0 sps:$4 sm:$0x11]  }
  0xc0   : > { %v2852_v26 = vrot.slane %v4809_v20, 1  ;;  %vm851_vm4 = vcmask 64544   ;;  %vm1141_vm5 = vcmask 97344   ;;  %v4817_v49 = vld [vmem:[%s5544_s29 + $0xa4] ss:$0 sps:$4 sm:$0x11]  }
  0xc1   : > { %2893 = vrot.lane.b32.xlu0 %v2847_v48, %s5297_s10  ;;  %v4779_v48 = vld [vmem:[%s5544_s29 + $0x8c] ss:$0 sps:$4 sm:$0x11]   ;;  %v2879_v54 = vrot.slane %v4817_v49, 1  ;;  %vm1319_vm6 = vcmask 130144   ;;  %vm1752_vm7 = vcmask 162944  }
  0xc2   : > { %v1640_v52 = vshll.u32 %v4779_v48, 16  ;;  %vm2041_vm8 = vcmask 195744   ;;  %v4839_v49 = vld [vmem:[%s5544_s29 + $0xa4] ss:$0 sps:$4 sm:$0x11]   ;;  %vm2219_vm9 = vcmask 228544  }
  0xc3   : > { %823 = vrot.lane.b32.xlu1 %v742_v58, %s5292_s27  ;;  %v1544_v58 = vshll.u32 %v4781_v53, 16  ;;  %v2444_v53 = vshll.u32 %v4801_v47, 16  ;;  %v4820_v47 = vld [vmem:[%s5544_s29 + $0x6c] sm:$0xff]   ;;  %vm2652_vm10 = vcmask 261344   ;;  %vm2941_vm11 = vcmask 294144   ;;  %s6230_s8 = scalar_lea.vmem [#allocation11], %s3802_s12 }
  0xc4   : > { %v1642_v57 = vrot.slane %v1640_v52, 1  ;;  %s4410_s6 = sshll.u32 %s5274_s18, 11  ;;  %s3677_s5 = sshll.u32 %s6230_s8, 4  ;;  %s6317_s5 = int_to_ptr.vmem [resolvable:$true] %s3677_s5 }
  0xc5   : > { %807 = vrot.lane.b32.xlu0 %v646_v63, %s5292_s27  ;;  %v4784_v63 = vld [vmem:[%s5544_s29 + $0x30] sm:$0xff]   ;;  %v1546_v0 = vrot.slane %v1544_v58, 1  ;;  %v2446_v58 = vrot.slane %v2444_v53, 1  ;;  %s6314_s28 = scalar_lea.hbm %s6373_s4, %s4410_s6  ;;  %s3662_s18 = scalar_lea.sflag [#allocation5], %s5540_s14 }
  0xc6   : > { %v1549_v4 = vshrl.u32 %v4784_v63, 16  ;;  %v1643_v6 = vsel %vm610_vm1, %v1638_v56, %v1642_v57  ;;  %v4804_v56 = vld [vmem:[%s5544_s29 + $0x3c] sm:$0xff]   ;;  %v2538_v57 = vor.u32 %v2537_v41, %v2533_v33  ;;  %v5298_v41 = vmov 0  }
  0xc7   : > { %2911 = vrot.lane.b32.xlu1 %v2874_v5, %s5297_s10  ;;  %v1551_v5 = vshll.u32 %v4784_v63, 16  ;;  %v1547_v9 = vsel %vm610_vm1, %v1542_v61, %v1546_v0  ;;  %v4805_v61 = vld [vmem:[%s5544_s29 + $0x44] ss:$0 sps:$4 sm:$0x11]   ;;  %v2549_v0 = vrot.slane %v2547_v55, 1  ;;  %v2449_v1 = vshrl.u32 %v4804_v56, 16 }
  0xc8   : > { %274 = vst.msk [vmem:[#allocation2 + $0x8] sm:$0xff] %vm272_vm2, %v5298_v41  ;;  %273 = vst.msk [vmem:[#allocation2] sm:$0xff] %vm272_vm2, %v5298_v41  ;;  %v4818_v55 = vld [vmem:[%s5544_s29 + $0x3c] sm:$0xfe]  }
  0xc9   : > { %2895 = vrot.lane.b32.xlu0 %v2850_v8, %s5297_s10  ;;  %v1556_v8 = vshll.u32 %v4785_v2, 16  ;;  %v1553_v11 = vrot.slane %v1551_v5, 1  ;;  %v2451_v2 = vshll.u32 %v4804_v56, 16  ;;  %v2456_v5 = vshll.u32 %v4805_v61, 16  ;;  %275 = vst.msk [vmem:[#allocation2 + $0x10] sm:$0xff] %vm272_vm2, %v5298_v41  ;;  %276 = vst.msk [vmem:[#allocation2 + $0x18] sm:$0xff] %vm272_vm2, %v5298_v41 }
  0xca   : > { %v2550_v12 = vor.u32 %v2549_v0, %v2545_v59  ;;  %277 = vst.msk [vmem:[#allocation2 + $0x20] sm:$0xff] %vm272_vm2, %v5298_v41  ;;  %278 = vst.msk [vmem:[#allocation2 + $0x28] sm:$0xff] %vm272_vm2, %v5298_v41  ;;  %v2854_v59 = vrot.slane %v4818_v55, 1  ;;  %v1664_v55 = vshll.u32 %v4839_v49, 16  ;;  %v4855_v49 = vld [vmem:[%s5544_s29 + $0x48] sm:$0xfe]  }
  0xcb   : > { %825 = vrot.lane.b32.xlu1 %v754_v19, %s5292_s27  ;;  %v1558_v14 = vrot.slane %v1556_v8, 1  ;;  %v1554_v15 = vor.u32 %v1553_v11, %v1549_v4  ;;  %v1976_v19 = vrot.slane %v4787_v13, 1  ;;  %v2554_v4 = vrot.slane %v2552_v60, 1  ;;  %v4806_v8 = vld [vmem:[%s5544_s29 + $0x90] sm:$0xfe]   ;;  %279 = vst.msk [vmem:[#allocation2 + $0x30] sm:$0xff] %vm272_vm2, %v5298_v41 }
  0xcc   : > { %v2453_v7 = vrot.slane %v2451_v2, 1  ;;  %v2458_v13 = vrot.slane %v2456_v5, 1  ;;  %v2875_v17 = vrot.slane %v4806_v8, 1  ;;  %280 = vst.msk [vmem:[#allocation2 + $0x38] sm:$0xff] %vm272_vm2, %v5298_v41  ;;  %281 = vst.msk [vmem:[#allocation2 + $0x40] sm:$0xff] %vm272_vm2, %v5298_v41  ;;  %v4824_v60 = vld [vmem:[%s5544_s29 + $0x3c] sm:$0xff]  }
  0xcd   : > { %809 = vrot.lane.b32.xlu0 %v658_v25, %s5292_s27  ;;  %v1559_v21 = vsel %vm610_vm1, %v1554_v15, %v1558_v14  ;;  %v4790_v25 = vld [vmem:[%s5544_s29 + $0x90] sm:$0xfe]   ;;  %v1977_v27 = vsel %vm1044_vm0, %v1975_v16, %v1976_v19  ;;  %v756_v14 = vshrl.u32 %v4810_v3, 16  ;;  %282 = vst.msk [vmem:[#allocation2 + $0x48] sm:$0xff] %vm272_vm2, %v5298_v41  ;;  %283 = vst.msk [vmem:[#allocation2 + $0x50] sm:$0xff] %vm272_vm2, %v5298_v41  ;;  %v672_v8 = vshrl.u32 %v4824_v60, 16 }
  0xce   : > { %v2454_v16 = vor.u32 %v2453_v7, %v2449_v1  ;;  %v4808_v19 = vld [vmem:[%s5544_s29 + $0x30] sm:$0xfe]   ;;  %284 = vst.msk [vmem:[#allocation2 + $0x58] sm:$0xff] %vm272_vm2, %v5298_v41  ;;  %285 = vst.msk [vmem:[#allocation2 + $0x60] sm:$0xff] %vm272_vm2, %v5298_v41 }
  0xcf   : > { %1113 = vrot.lane.b32.xlu1 %v1077_v28, %s5291_s23  ;;  %v1978_v28 = vrot.slane %v4790_v25, 1  ;;  %v2851_v23 = vrot.slane %v4808_v19, 1  ;;  %v2555_v25 = vsel %vm610_vm1, %v2550_v12, %v2554_v4  ;;  %286 = vst.msk [vmem:[#allocation2 + $0x68] sm:$0xff] %vm272_vm2, %v5298_v41  ;;  %287 = vst.msk [vmem:[#allocation2 + $0x70] sm:$0xff] %vm272_vm2, %v5298_v41 }
  0xd0   : > { %v2459_v30 = vsel %vm610_vm1, %v2454_v16, %v2458_v13  ;;  %288 = vst.msk [vmem:[#allocation2 + $0x78] sm:$0xff] %vm272_vm2, %v5298_v41  ;;  %v4823_v2 = vld [vmem:[%s5544_s29 + $0xa4] ss:$0 sps:$4 sm:$0x11]  }
  0xd1   : > { %1097 = vrot.lane.b32.xlu0 %v1053_v32, %s5291_s23  ;;  %v4793_v32 = vld [vmem:[%s5544_s29 + $0x38] ss:$0 sps:$4 sm:$0x11]   ;;  %427 = vst.msk [vmem:[#allocation2 + $0x48] sm:$0xff] %vm417_vm3, %v4820_v47  ;;  %v4836_v47 = vld [vmem:[%s5544_s29 + $0xa8] sm:$0xff]  }
  0xd2   : > { %v1955_v36 = vrot.slane %v4793_v32, 1  ;;  %v4825_v7 = vld [vmem:[%s5544_s29 + $0x44] ss:$0 sps:$4 sm:$0x11]  }
  0xd3   : > { %1115 = vrot.lane.b32.xlu1 %v1080_v38, %s5291_s23  ;;  %v1980_v38 = vsel %vm1044_vm0, %v1978_v28, %v1979_v29 }
  0xd4   : > { %v1956_v39 = vsel %vm1044_vm0, %v1954_v34, %v1955_v36  ;;  %v4813_v34 = vld [vmem:[%s5544_s29 + $0x38] ss:$0 sps:$4 sm:$0x11]   ;;  %v4814_v36 = vld [vmem:[%s5544_s29 + $0xc] sm:$0xff]  }
  0xd5   : > { %1099 = vrot.lane.b32.xlu0 %v1056_v45, %s5291_s23  ;;  %v2439_v45 = vshll.u32 %v4800_v37, 16  ;;  %419 = vst.msk [vmem:[#allocation2 + $0x8] sm:$0xff] %vm417_vm3, %v4814_v36  ;;  %v4832_v36 = vld [vmem:[%s5544_s29 + $0x3c] sm:$0xfe]  }
  0xd7   : > { %1291 = vrot.lane.b32.xlu1 %v4774_v42, %s5290_s25  ;;  %v2437_v42 = vshrl.u32 %v4800_v37, 16  ;;  %v2441_v48 = vrot.slane %v2439_v45, 1 }
  0xd9   : > { %1275 = vrot.lane.b32.xlu0 %v4775_v44, %s5290_s25  ;;  %v4799_v44 = vld [vmem:[%s5544_s29 + $0x98] ss:$0 sps:$4 sm:$0x11]   ;;  %v2442_v62 = vor.u32 %v2441_v48, %v2437_v42  ;;  %v4815_v42 = vld [vmem:[%s5544_s29] sm:$0xff]  }
  0xda   : > { %v2540_v46 = vshll.u32 %v4799_v44, 16  ;;  %418 = vst.msk [vmem:[#allocation2] sm:$0xff] %vm417_vm3, %v4815_v42  ;;  %v4816_v48 = vld [vmem:[%s5544_s29 + $0x9c] sm:$0xfe]  }
  0xdb   : > { %1293 = vrot.lane.b32.xlu1 %v4776_v50, %s5290_s25  ;;  %v4796_v50 = vld [vmem:[%s5544_s29 + $0x9c] sm:$0xff]   ;;  %v2447_v15 = vsel %vm610_vm1, %v2442_v62, %v2446_v58  ;;  %v2878_v53 = vrot.slane %v4816_v48, 1 }
  0xdc   : > { %v2542_v52 = vrot.slane %v2540_v46, 1  ;;  %v4822_v58 = vld [vmem:[%s5544_s29 + $0x9c] sm:$0xff]  }
  0xdd   : > { %1277 = vrot.lane.b32.xlu0 %v4777_v51, %s5290_s25  ;;  %v4797_v51 = vld [vmem:[%s5544_s29 + $0x3c] sm:$0xff]   ;;  %v2880_v62 = vsel %vm1044_vm0, %v2878_v53, %v2879_v54  ;;  %v768_v1 = vshrl.u32 %v4822_v58, 16  ;;  %v4837_v54 = vld [vmem:[%s5544_s29 + $0x48] sm:$0xff]  }
  0xde   : > { %v2543_v10 = vsel %vm610_vm1, %v2538_v57, %v2542_v52  ;;  %v4819_v57 = vld [vmem:[%s5544_s29 + $0x44] ss:$0 sps:$4 sm:$0x11]   ;;  %v4834_v42 = vld [vmem:[%s5544_s29 + $0x9c] sm:$0xff]  }
  0xdf   : > { %1724 = vrot.lane.b32.xlu1 %v1643_v6, %s5293_s7  ;;  %v5760_v6 = vld [vmem:[%s5544_s29 + $0x30] sm:$0xff]   ;;  %v2855_v0 = vrot.slane %v4819_v57, 1  ;;  %v4838_v48 = vld [vmem:[%s5544_s29 + $0x9c] sm:$0xff]  }
  0xe0   : > { %v660_v24 = vshrl.u32 %v5760_v6, 16  ;;  %v662_v29 = vshll.u32 %v5760_v6, 16  ;;  %v775_v6 = vshll.u32 %v4823_v2, 16  ;;  %v4843_v2 = vld [vmem:[%s5544_s29 + $0xa8] sm:$0xff]  }
  0xe1   : > { %1708 = vrot.lane.b32.xlu0 %v1547_v9, %s5293_s7  ;;  %v4807_v9 = vld [vmem:[%s5544_s29 + $0x98] ss:$0 sps:$4 sm:$0x11]   ;;  %v2856_v4 = vsel %vm1044_vm0, %v2854_v59, %v2855_v0 }
  0xe2   : > { %v664_v35 = vrot.slane %v662_v29, 1  ;;  %v777_v13 = vrot.slane %v775_v6, 1 }
  0xe3   : > { %1726 = vrot.lane.b32.xlu1 %v1655_v18, %s5293_s7  ;;  %v2876_v18 = vrot.slane %v4807_v9, 1  ;;  %v674_v9 = vshll.u32 %v4824_v60, 16 }
  0xe4   : > { %v665_v44 = vor.u32 %v664_v35, %v660_v24  ;;  %v4828_v24 = vld [vmem:[%s5544_s29 + $0x30] sm:$0xfe]  }
  0xe5   : > { %1710 = vrot.lane.b32.xlu0 %v1559_v21, %s5293_s7  ;;  %v758_v21 = vshll.u32 %v4810_v3, 16  ;;  %v2877_v32 = vsel %vm1044_vm0, %v2875_v17, %v2876_v18  ;;  %v770_v3 = vshll.u32 %v4822_v58, 16  ;;  %v676_v17 = vrot.slane %v674_v9, 1  ;;  %v4827_v18 = vld [vmem:[%s5544_s29 + $0x98] ss:$0 sps:$4 sm:$0x11]  }
  0xe6   : > { %v1057_v29 = vrot.slane %v4828_v24, 1  ;;  %v1671_v9 = vshll.u32 %v4843_v2, 16 }
  0xe7   : > { %2013 = vrot.lane.b32.xlu1 %v1977_v27, %s5294_s22  ;;  %v4811_v27 = vld [vmem:[%s5544_s29 + $0x98] ss:$0 sps:$4 sm:$0x11]   ;;  %v760_v28 = vrot.slane %v758_v21, 1  ;;  %v772_v5 = vrot.slane %v770_v3, 1 }
  0xe8   : > { %v763_v33 = vshll.u32 %v4811_v27, 16 }
  0xe9   : > { %1997 = vrot.lane.b32.xlu0 %v1953_v31, %s5294_s22  ;;  %v773_v12 = vor.u32 %v772_v5, %v768_v1 }
  0xeb   : > { %2015 = vrot.lane.b32.xlu1 %v1980_v38, %s5294_s22  ;;  %v761_v38 = vor.u32 %v760_v28, %v756_v14  ;;  %v679_v14 = vshll.u32 %v4825_v7, 16  ;;  %v778_v19 = vsel %vm610_vm1, %v773_v12, %v777_v13  ;;  %v4844_v7 = vld [vmem:[%s5544_s29 + $0xb0] ss:$0 sps:$4 sm:$0x11]   ;;  %v4845_v13 = vld [vmem:[%s5544_s29 + $0x48] sm:$0xff]  }
  0xed   : > { %1999 = vrot.lane.b32.xlu0 %v1956_v39, %s5294_s22  ;;  %v765_v39 = vrot.slane %v763_v33, 1  ;;  %v681_v20 = vrot.slane %v679_v14, 1  ;;  %v1673_v14 = vrot.slane %v1671_v9, 1 }
  0xef   : > { %2191 = vrot.lane.b32.xlu1 %v4794_v40, %s5295_s9  ;;  %v667_v40 = vshll.u32 %v4813_v34, 16 }
  0xf1   : > { %2175 = vrot.lane.b32.xlu0 %v4795_v43, %s5295_s9  ;;  %v2853_v43 = vsel %vm1044_vm0, %v2851_v23, %v2852_v26  ;;  %v669_v46 = vrot.slane %v667_v40, 1  ;;  %v1082_v23 = vrot.slane %v4827_v18, 1  ;;  %v1060_v40 = vrot.slane %v4832_v36, 1  ;;  %v4851_v36 = vld [vmem:[%s5544_s29 + $0x44] ss:$0 sps:$4 sm:$0x11]  }
  0xf3   : > { %2193 = vrot.lane.b32.xlu1 %v4796_v50, %s5295_s9  ;;  %v4821_v50 = vld [vmem:[%s5544_s29 + $0x60] sm:$0xff]   ;;  %v670_v52 = vsel %vm610_vm1, %v665_v44, %v669_v46 }
  0xf4   : > { %426 = vst.msk [vmem:[#allocation2 + $0x40] sm:$0xff] %vm417_vm3, %v4821_v50  ;;  %v4840_v50 = vld [vmem:[%s5544_s29 + $0x3c] sm:$0xff]  }
  0xf5   : > { %2177 = vrot.lane.b32.xlu0 %v4797_v51, %s5295_s9  ;;  %v766_v51 = vsel %vm610_vm1, %v761_v38, %v765_v39  ;;  %v1561_v57 = vshrl.u32 %v4840_v50, 16  ;;  %v1563_v58 = vshll.u32 %v4840_v50, 16  ;;  %v4856_v50 = vld [vmem:[%s5544_s29 + $0x50] ss:$0 sps:$4 sm:$0x11]  }
  0xf7   : > { %2624 = vrot.lane.b32.xlu1 %v2543_v10, %s5296_s26  ;;  %v1565_v0 = vrot.slane %v1563_v58, 1  ;;  %v4859_v58 = vld [vmem:[%s5544_s29 + $0x48] sm:$0xff]  }
  0xf9   : > { %v5756_v63 = vpop.permute.xlu1 %1287  ;;  %2608 = vrot.lane.b32.xlu0 %v2447_v15, %s5296_s26  ;;  %v4826_v15 = vld [vmem:[%s5544_s29 + $0x90] sm:$0xfe]   ;;  %v1566_v5 = vor.u32 %v1565_v0, %v1561_v57 }
  0xfa   : > { %v5767_v11 = vpop.permute.xlu0 %1271  ;;  %v1081_v21 = vrot.slane %v4826_v15, 1  ;;  %v1676_v15 = vshll.u32 %v4844_v7, 16 }
  0xfb   : > { %2626 = vrot.lane.b32.xlu1 %v2555_v25, %s5296_s26  ;;  %v4829_v25 = vld [vmem:[%s5544_s29 + $0x38] ss:$0 sps:$4 sm:$0x11]  }
  0xfd   : > { %v5773_v22 = vpop.permute.xlu1 %1109  ;;  %2610 = vrot.lane.b32.xlu0 %v2459_v30, %s5296_s26  ;;  %v1058_v30 = vrot.slane %v4829_v25, 1 }
  0xff   : > { %v5781_v31 = vpop.permute.xlu0 %1093  ;;  %2913 = vrot.lane.b32.xlu1 %v2877_v32, %s5297_s10  ;;  %v4831_v32 = vld [vmem:[%s5544_s29 + $0xa4] ss:$0 sps:$4 sm:$0x11]  }
 0x100   : > { %v1085_v35 = vrot.slane %v4831_v32, 1 }
 0x101   : > { %v5788_v37 = vpop.permute.xlu1 %1111  ;;  %2897 = vrot.lane.b32.xlu0 %v2853_v43, %s5297_s10 }
 0x103   : > { %v1096_v45 = vpop.permute.xlu0 %1095  ;;  %827 = vrot.lane.b32.xlu1 %v766_v51, %s5292_s27  ;;  %v1657_v51 = vshrl.u32 %v4838_v48, 16 }
 0x105   : > { %v806_v56 = vpop.permute.xlu1 %805  ;;  %811 = vrot.lane.b32.xlu0 %v670_v52, %s5292_s27  ;;  %v1659_v52 = vshll.u32 %v4838_v48, 16 }
 0x106   : > { %853 = vst.msk [vmem:[#allocation2 + $0x8] sm:$0xff] %vm851_vm4, %v806_v56  ;;  %v4841_v56 = vld [vmem:[%s5544_s29 + $0x44] ss:$0 sps:$4 sm:$0x11]  }
 0x107   : > { %v804_v61 = vpop.permute.xlu0 %803  ;;  %1143 = vst.msk [vmem:[#allocation2 + $0x8] sm:$0xff] %vm1141_vm5, %v1096_v45  ;;  %2915 = vrot.lane.b32.xlu1 %v2880_v62, %s5297_s10  ;;  %v4835_v45 = vld [vmem:[%s5544_s29 + $0x3c] sm:$0xff]   ;;  %v1661_v60 = vrot.slane %v1659_v52, 1  ;;  %v1666_v62 = vrot.slane %v1664_v55, 1  ;;  %v1568_v1 = vshll.u32 %v4841_v56, 16  ;;  %v1960_v52 = vrot.slane %v4855_v49, 1 }
 0x108   : > { %852 = vst.msk [vmem:[#allocation2] sm:$0xff] %vm851_vm4, %v804_v61  ;;  %v4842_v61 = vld [vmem:[#allocation6] sm:$0xff]   ;;  %v4858_v56 = vld [vmem:[%s5544_s29 + $0xa8] sm:$0xff]  }
 0x109   : > { %1142 = vst.msk [vmem:[#allocation2] sm:$0xff] %vm1141_vm5, %v5781_v31  ;;  %2899 = vrot.lane.b32.xlu0 %v2856_v4, %s5297_s10  ;;  %v822_v10 = vpop.permute.xlu1 %821  ;;  %v4830_v31 = vld [vmem:[%s5544_s29 + $0x9c] sm:$0xfe]   ;;  %v1662_v3 = vor.u32 %v1661_v60, %v1657_v51  ;;  %4530 = vmatprep.subr.bf16.mxu0 %v4842_v61  ;;  %v1570_v6 = vrot.slane %v1568_v1, 1  ;;  %v4861_v60 = vld [vmem:[%s5544_s29 + $0xb4] sm:$0xff]  }
 0x10a   : > { %1320 = vst.msk [vmem:[#allocation2] sm:$0xff] %vm1319_vm6, %v5767_v11  ;;  %v677_v11 = vor.u32 %v676_v17, %v672_v8  ;;  %v1084_v33 = vrot.slane %v4830_v31, 1  ;;  %4578 = vmatprep.subr.bf16.mxu1 %v4842_v61  ;;  %4531 = vmatpush3.bf16.msra.mxu0 %v4842_v61  ;;  %v1669_v8 = vshrl.u32 %v4843_v2, 16  ;;  %v4847_v17 = vld [vmem:[#allocation6 + $0x8] sm:$0xff]  }
 0x10b   : > { %861 = vst.msk [vmem:[#allocation2 + $0x48] sm:$0xff] %vm851_vm4, %v822_v10  ;;  %v820_v16 = vpop.permute.xlu0 %819  ;;  %829 = vrot.lane.b32.xlu1 %v778_v19, %s5292_s27  ;;  %v1667_v12 = vsel %vm610_vm1, %v1662_v3, %v1666_v62  ;;  %4586 = vmatpush3.bf16.msra.mxu1 %v4842_v61  ;;  %v1571_v18 = vsel %vm610_vm1, %v1566_v5, %v1570_v6  ;;  %v1573_v19 = vshrl.u32 %v4845_v13, 16  ;;  %v4863_v62 = vld [vmem:[%s5544_s29 + $0x78] sm:$0xff]   ;;  %v4867_v5 = vld [vmem:[%s5544_s29 + $0xb0] ss:$0 sps:$4 sm:$0x11]  }
 0x10c   : > { %1151 = vst.msk [vmem:[#allocation2 + $0x48] sm:$0xff] %vm1141_vm5, %v5788_v37  ;;  %v682_v27 = vsel %vm610_vm1, %v677_v11, %v681_v20  ;;  %v4833_v37 = vld [vmem:[%s5544_s29 + $0x44] ss:$0 sps:$4 sm:$0x11]   ;;  %v1086_v39 = vsel %vm1044_vm0, %v1084_v33, %v1085_v35  ;;  %v1575_v20 = vshll.u32 %v4845_v13, 16  ;;  %v1674_v11 = vor.u32 %v1673_v14, %v1669_v8  ;;  %4532 = vmatprep.subr.bf16.mxu0 %v4847_v17  ;;  %v4862_v1 = vld [vmem:[%s5544_s29 + $0x54] sm:$0xff]  }
 0x10d   : > { %860 = vst.msk [vmem:[#allocation2 + $0x40] sm:$0xff] %vm851_vm4, %v820_v16  ;;  %v1290_v26 = vpop.permute.xlu1 %1289  ;;  %813 = vrot.lane.b32.xlu0 %v682_v27, %s5292_s27  ;;  %v1061_v41 = vrot.slane %v4833_v37, 1  ;;  %v4846_v16 = vld [vmem:[%s5544_s29 + $0x50] ss:$0 sps:$4 sm:$0x11]   ;;  %4579 = vmatprep.subr.bf16.mxu1 %v4847_v17  ;;  %v4864_v2 = vld [vmem:[%s5544_s29 + $0x18] sm:$0xff]  }
 0x10e   : > { %1150 = vst.msk [vmem:[#allocation2 + $0x40] sm:$0xff] %vm1141_vm5, %v5773_v22  ;;  %v1083_v22 = vsel %vm1044_vm0, %v1081_v21, %v1082_v23  ;;  %v1678_v23 = vrot.slane %v1676_v15, 1  ;;  %v1580_v24 = vshll.u32 %v4846_v16, 16  ;;  %4533 = vmatpush3.bf16.msra.mxu0 %v4847_v17  ;;  %v4848_v27 = vld [vmem:[%s5544_s29 + $0x9c] sm:$0xfe]  }
 0x10f   : > { %1328 = vst.msk [vmem:[#allocation2 + $0x40] sm:$0xff] %vm1319_vm6, %v5756_v63  ;;  %1329 = vst.msk [vmem:[#allocation2 + $0x48] sm:$0xff] %vm1319_vm6, %v1290_v26  ;;  %v1274_v28 = vpop.permute.xlu0 %1273  ;;  %1117 = vrot.lane.b32.xlu1 %v1083_v22, %s5291_s23  ;;  %v1059_v63 = vsel %vm1044_vm0, %v1057_v29, %v1058_v30  ;;  %v1062_v43 = vsel %vm1044_vm0, %v1060_v40, %v1061_v41  ;;  %v1577_v26 = vrot.slane %v1575_v20, 1  ;;  %4587 = vmatpush3.bf16.msra.mxu1 %v4847_v17  ;;  %v4849_v30 = vld [vmem:[%s5544_s29 + $0xa4] ss:$0 sps:$4 sm:$0x11]  }
 0x110   : > { %1321 = vst.msk [vmem:[#allocation2 + $0x8] sm:$0xff] %vm1319_vm6, %v1274_v28  ;;  %v4852_v28 = vld [vmem:[#allocation6 + $0x10] sm:$0xff]   ;;  %v1679_v22 = vsel %vm610_vm1, %v1674_v11, %v1678_v23  ;;  %v1582_v29 = vrot.slane %v1580_v24, 1  ;;  %v1981_v32 = vrot.slane %v4848_v27, 1  ;;  %v1958_v41 = vrot.slane %v4851_v36, 1  ;;  %v4865_v3 = vld [vmem:[#allocation6 + $0x28] sm:$0xff]  }
 0x111   : > { %v1721_v34 = vpop.permute.xlu1 %1720  ;;  %1101 = vrot.lane.b32.xlu0 %v1059_v63, %s5291_s23  ;;  %v1578_v31 = vor.u32 %v1577_v26, %v1573_v19  ;;  %4534 = vmatprep.subr.bf16.mxu0 %v4852_v28  ;;  %v4857_v63 = vld [vmem:[#allocation6 + $0x18] sm:$0xff]   ;;  %v4850_v35 = vld [vmem:[%s5544_s29 + $0x3c] sm:$0xfe]   ;;  %428 = vst.msk [vmem:[#allocation2 + $0x50] sm:$0xff] %vm417_vm3, %v4863_v62  ;;  %420 = vst.msk [vmem:[#allocation2 + $0x10] sm:$0xff] %vm417_vm3, %v4864_v2 }
 0x112   : > { %1761 = vst.msk [vmem:[#allocation2 + $0x40] sm:$0xff] %vm1752_vm7, %v1721_v34  ;;  %v1982_v34 = vrot.slane %v4849_v30, 1  ;;  %4580 = vmatprep.subr.bf16.mxu1 %v4852_v28  ;;  %4535 = vmatpush3.bf16.msra.mxu0 %v4852_v28  ;;  %v1957_v40 = vrot.slane %v4850_v35, 1  ;;  %v4869_v13 = vld [vmem:[%s5544_s29 + $0x50] ss:$0 sps:$4 sm:$0x11]  }
 0x113   : > { %v1705_v38 = vpop.permute.xlu0 %1704  ;;  %1119 = vrot.lane.b32.xlu1 %v1086_v39, %s5291_s23  ;;  %v1583_v37 = vsel %vm610_vm1, %v1578_v31, %v1582_v29  ;;  %4588 = vmatpush3.bf16.msra.mxu1 %v4852_v28  ;;  %v4870_v14 = vld [vmem:[#allocation6 + $0x30] sm:$0xff]   ;;  %v2468_v19 = vshll.u32 %v4869_v13, 16  ;;  %v4871_v26 = vld [vmem:[%s5544_s29 + $0xb4] sm:$0xff]   ;;  %v4872_v27 = vld [vmem:[%s5544_s29 + $0xbc] ss:$0 sps:$4 sm:$0x11]  }
 0x114   : > { %1753 = vst.msk [vmem:[#allocation2] sm:$0xff] %vm1752_vm7, %v1705_v38  ;;  %v1983_v39 = vsel %vm1044_vm0, %v1981_v32, %v1982_v34  ;;  %4536 = vmatprep.subr.bf16.mxu0 %v4857_v63  ;;  %4581 = vmatprep.subr.bf16.mxu1 %v4857_v63  ;;  %v2569_v31 = vshrl.u32 %v4871_v26, 16  ;;  %v2571_v32 = vshll.u32 %v4871_v26, 16 }
 0x115   : > { %v1723_v44 = vpop.permute.xlu1 %1722  ;;  %1103 = vrot.lane.b32.xlu0 %v1062_v43, %s5291_s23  ;;  %v4854_v43 = vld [vmem:[%s5544_s29 + $0xb0] ss:$0 sps:$4 sm:$0x11]   ;;  %v2470_v28 = vrot.slane %v2468_v19, 1 }
 0x116   : > { %1762 = vst.msk [vmem:[#allocation2 + $0x48] sm:$0xff] %vm1752_vm7, %v1723_v44  ;;  %v1959_v44 = vsel %vm1044_vm0, %v1957_v40, %v1958_v41  ;;  %v1985_v48 = vrot.slane %v4854_v43, 1  ;;  %4537 = vmatpush3.bf16.msra.mxu0 %v4857_v63 }
 0x117   : > { %v1707_v46 = vpop.permute.xlu0 %1706  ;;  %1295 = vrot.lane.b32.xlu1 %v4834_v42, %s5290_s25  ;;  %v4853_v42 = vld [vmem:[%s5544_s29 + $0xa8] sm:$0xfe]   ;;  %4589 = vmatpush3.bf16.msra.mxu1 %v4857_v63  ;;  %v2576_v63 = vshll.u32 %v4872_v27, 16 }
 0x118   : > { %1754 = vst.msk [vmem:[#allocation2 + $0x8] sm:$0xff] %vm1752_vm7, %v1707_v46 }
 0x119   : > { %v2010_v53 = vpop.permute.xlu1 %2009  ;;  %1279 = vrot.lane.b32.xlu0 %v4835_v45, %s5290_s25  ;;  %v2578_v41 = vrot.slane %v2576_v63, 1 }
 0x11a   : > { %2050 = vst.msk [vmem:[#allocation2 + $0x40] sm:$0xff] %vm2041_vm8, %v2010_v53  ;;  %v4860_v53 = vld [vmem:[#allocation6 + $0x20] sm:$0xff]  }
 0x11b   : > { %v1994_v59 = vpop.permute.xlu0 %1993  ;;  %1297 = vrot.lane.b32.xlu1 %v4836_v47, %s5290_s25  ;;  %v1984_v47 = vrot.slane %v4853_v42, 1  ;;  %4538 = vmatprep.subr.bf16.mxu0 %v4860_v53 }
 0x11c   : > { %2042 = vst.msk [vmem:[#allocation2] sm:$0xff] %vm2041_vm8, %v1994_v59  ;;  %4582 = vmatprep.subr.bf16.mxu1 %v4860_v53  ;;  %4539 = vmatpush3.bf16.msra.mxu0 %v4860_v53 }
 0x11d   : > { %v2012_v4 = vpop.permute.xlu1 %2011  ;;  %1281 = vrot.lane.b32.xlu0 %v4837_v54, %s5290_s25  ;;  %v1986_v51 = vsel %vm1044_vm0, %v1984_v47, %v1985_v48  ;;  %v1961_v54 = vrot.slane %v4856_v50, 1  ;;  %4590 = vmatpush3.bf16.msra.mxu1 %v4860_v53 }
 0x11e   : > { %2051 = vst.msk [vmem:[#allocation2 + $0x48] sm:$0xff] %vm2041_vm8, %v2012_v4  ;;  %v4866_v4 = vld [vmem:[%s5544_s29 + $0xa8] sm:$0xff]   ;;  %4540 = vmatprep.subr.bf16.mxu0 %v4865_v3  ;;  %4583 = vmatprep.subr.bf16.mxu1 %v4865_v3 }
 0x11f   : > { %v1996_v10 = vpop.permute.xlu0 %1995  ;;  %1728 = vrot.lane.b32.xlu1 %v1667_v12, %s5293_s7  ;;  %v1962_v59 = vsel %vm1044_vm0, %v1960_v52, %v1961_v54  ;;  %v2557_v8 = vshrl.u32 %v4866_v4, 16  ;;  %v2559_v9 = vshll.u32 %v4866_v4, 16  ;;  %v4868_v12 = vld [vmem:[%s5544_s29 + $0x48] sm:$0xff]  }
 0x120   : > { %2043 = vst.msk [vmem:[#allocation2 + $0x8] sm:$0xff] %vm2041_vm8, %v1996_v10  ;;  %4541 = vmatpush3.bf16.msra.mxu0 %v4865_v3  ;;  %v2564_v10 = vshll.u32 %v4867_v5, 16  ;;  %v2461_v17 = vshrl.u32 %v4868_v12, 16  ;;  %v4883_v5 = vld [vmem:[%s5544_s29 + $0xb0] ss:$0 sps:$4 sm:$0x11]  }
 0x121   : > { %v2188_v21 = vpop.permute.xlu1 %2187  ;;  %1712 = vrot.lane.b32.xlu0 %v1571_v18, %s5293_s7  ;;  %4591 = vmatpush3.bf16.msra.mxu1 %v4865_v3  ;;  %v2561_v15 = vrot.slane %v2559_v9, 1  ;;  %v2463_v18 = vshll.u32 %v4868_v12, 16  ;;  %v4885_v12 = vld [vmem:[%s5544_s29 + $0x50] ss:$0 sps:$4 sm:$0x11]  }
 0x122   : > { %2228 = vst.msk [vmem:[#allocation2 + $0x40] sm:$0xff] %vm2219_vm9, %v2188_v21  ;;  %v2566_v16 = vrot.slane %v2564_v10, 1  ;;  %4542 = vmatprep.subr.bf16.mxu0 %v4870_v14  ;;  %4584 = vmatprep.subr.bf16.mxu1 %v4870_v14  ;;  %v787_v10 = vshll.u32 %v4883_v5, 16  ;;  %v691_v19 = vshll.u32 %v4885_v12, 16 }
 0x123   : > { %v2172_v25 = vpop.permute.xlu0 %2171  ;;  %1730 = vrot.lane.b32.xlu1 %v1679_v22, %s5293_s7  ;;  %v2562_v11 = vor.u32 %v2561_v15, %v2557_v8  ;;  %v2465_v23 = vrot.slane %v2463_v18, 1  ;;  %v4873_v22 = vld [vmem:[%s5544_s29 + $0x54] sm:$0xff]   ;;  %v4899_v5 = vld [vmem:[%s5544_s29 + $0xbc] ss:$0 sps:$4 sm:$0x11]  }
 0x124   : > { %2220 = vst.msk [vmem:[#allocation2] sm:$0xff] %vm2219_vm9, %v2172_v25  ;;  %4543 = vmatpush3.bf16.msra.mxu0 %v4870_v14  ;;  %v2473_v34 = vshrl.u32 %v4873_v22, 16  ;;  %v2475_v35 = vshll.u32 %v4873_v22, 16  ;;  %v789_v18 = vrot.slane %v787_v10, 1  ;;  %v4900_v10 = vld [vmem:[%s5544_s29 + $0x54] sm:$0xfe]  }
 0x125   : > { %v2190_v33 = vpop.permute.xlu1 %2189  ;;  %1714 = vrot.lane.b32.xlu0 %v1583_v37, %s5293_s7  ;;  %4592 = vmatpush3.bf16.msra.mxu1 %v4870_v14  ;;  %v2567_v29 = vsel %vm610_vm1, %v2562_v11, %v2566_v16  ;;  %v2466_v30 = vor.u32 %v2465_v23, %v2461_v17  ;;  %v4887_v23 = vld [vmem:[%s5544_s29 + $0xbc] ss:$0 sps:$4 sm:$0x11]  }
 0x126   : > { %2229 = vst.msk [vmem:[#allocation2 + $0x48] sm:$0xff] %vm2219_vm9, %v2190_v33  ;;  %v4874_v33 = vld [vmem:[%s5544_s29 + $0x5c] ss:$0 sps:$4 sm:$0x11]   ;;  %v2477_v42 = vrot.slane %v2475_v35, 1  ;;  %v2885_v22 = vrot.slane %v4887_v23, 1 }
 0x127   : > { %v2174_v38 = vpop.permute.xlu0 %2173  ;;  %2017 = vrot.lane.b32.xlu1 %v1983_v39, %s5294_s22  ;;  %v2471_v37 = vsel %vm610_vm1, %v2466_v30, %v2470_v28  ;;  %v4875_v39 = vld [vmem:[%s5544_s29 + $0x84] sm:$0xff]   ;;  %v2480_v43 = vshll.u32 %v4874_v33, 16  ;;  %v4889_v30 = vld [vmem:[%s5544_s29 + $0x5c] ss:$0 sps:$4 sm:$0x11]  }
 0x128   : > { %2221 = vst.msk [vmem:[#allocation2 + $0x8] sm:$0xff] %vm2219_vm9, %v2174_v38  ;;  %v2573_v38 = vrot.slane %v2571_v32, 1  ;;  %v2478_v47 = vor.u32 %v2477_v42, %v2473_v34  ;;  %v2861_v34 = vrot.slane %v4889_v30, 1  ;;  %v4891_v35 = vld [vmem:[%s5544_s29 + $0xbc] ss:$0 sps:$4 sm:$0x11]  }
 0x129   : > { %v2621_v45 = vpop.permute.xlu1 %2620  ;;  %2001 = vrot.lane.b32.xlu0 %v1959_v44, %s5294_s22  ;;  %v4876_v44 = vld [vmem:[%s5544_s29 + $0x24] sm:$0xff]   ;;  %429 = vst.msk [vmem:[#allocation2 + $0x58] sm:$0xff] %vm417_vm3, %v4875_v39  ;;  %v2482_v48 = vrot.slane %v2480_v43, 1  ;;  %v4893_v42 = vld [vmem:[%s5544_s29 + $0x5c] ss:$0 sps:$4 sm:$0x11]  }
 0x12a   : > { %2661 = vst.msk [vmem:[#allocation2 + $0x40] sm:$0xff] %vm2652_vm10, %v2621_v45  ;;  %v2574_v45 = vor.u32 %v2573_v38, %v2569_v31  ;;  %v4901_v12 = vld [vmem:[%s5544_s29 + $0x5c] ss:$0 sps:$4 sm:$0x11]  }
 0x12b   : > { %v2605_v46 = vpop.permute.xlu0 %2604  ;;  %2019 = vrot.lane.b32.xlu1 %v1986_v51, %s5294_s22  ;;  %421 = vst.msk [vmem:[#allocation2 + $0x18] sm:$0xff] %vm417_vm3, %v4876_v44  ;;  %v4878_v51 = vld [vmem:[%s5544_s29 + $0xa8] sm:$0xfe]   ;;  %v2483_v54 = vsel %vm610_vm1, %v2478_v47, %v2482_v48  ;;  %v703_v48 = vshll.u32 %v4893_v42, 16 }
 0x12c   : > { %2653 = vst.msk [vmem:[#allocation2] sm:$0xff] %vm2652_vm10, %v2605_v46  ;;  %v4877_v46 = vld [vmem:[#allocation6 + $0x38] sm:$0xff]   ;;  %v2579_v50 = vsel %vm610_vm1, %v2574_v45, %v2578_v41  ;;  %v799_v41 = vshll.u32 %v4891_v35, 16 }
 0x12d   : > { %v2623_v55 = vpop.permute.xlu1 %2622  ;;  %2003 = vrot.lane.b32.xlu0 %v1962_v59, %s5294_s22  ;;  %4544 = vmatprep.subr.bf16.mxu0 %v4877_v46  ;;  %v4882_v59 = vld [vmem:[%s5544_s29 + $0xa8] sm:$0xff]  }
 0x12e   : > { %2662 = vst.msk [vmem:[#allocation2 + $0x48] sm:$0xff] %vm2652_vm10, %v2623_v55  ;;  %4585 = vmatprep.subr.bf16.mxu1 %v4877_v46  ;;  %4545 = vmatpush3.bf16.msra.mxu0 %v4877_v46  ;;  %v4879_v55 = vld [vmem:[%s5544_s29 + $0xb0] ss:$0 sps:$4 sm:$0x11]   ;;  %v801_v47 = vrot.slane %v799_v41, 1 }
 0x12f   : > { %v2607_v57 = vpop.permute.xlu0 %2606  ;;  %2195 = vrot.lane.b32.xlu1 %v4858_v56, %s5295_s9  ;;  %4593 = vmatpush3.bf16.msra.mxu1 %v4877_v46 }
 0x130   : > { %2654 = vst.msk [vmem:[#allocation2 + $0x8] sm:$0xff] %vm2652_vm10, %v2607_v57  ;;  %v2881_v57 = vrot.slane %v4878_v51, 1  ;;  %v4894_v51 = vld [vmem:[%s5544_s29 + $0xa8] sm:$0xfe]  }
 0x131   : > { %v2910_v61 = vpop.permute.xlu1 %2909  ;;  %2179 = vrot.lane.b32.xlu0 %v4859_v58, %s5295_s9  ;;  %v4880_v58 = vld [vmem:[%s5544_s29 + $0x48] sm:$0xfe]  }
 0x132   : > { %2950 = vst.msk [vmem:[#allocation2 + $0x40] sm:$0xff] %vm2941_vm11, %v2910_v61  ;;  %v4881_v61 = vld [vmem:[%s5544_s29 + $0x50] ss:$0 sps:$4 sm:$0x11]  }
 0x133   : > { %v2894_v0 = vpop.permute.xlu0 %2893  ;;  %2197 = vrot.lane.b32.xlu1 %v4861_v60, %s5295_s9  ;;  %v2882_v60 = vrot.slane %v4879_v55, 1  ;;  %v2858_v4 = vrot.slane %v4881_v61, 1  ;;  %v4897_v61 = vld [vmem:[%s5544_s29 + $0x50] ss:$0 sps:$4 sm:$0x11]  }
 0x134   : > { %2942 = vst.msk [vmem:[#allocation2] sm:$0xff] %vm2941_vm11, %v2894_v0  ;;  %v2857_v0 = vrot.slane %v4880_v58, 1  ;;  %v1087_v58 = vrot.slane %v4894_v51, 1  ;;  %v4913_v51 = vld [vmem:[%s5544_s29 + $0x68] ss:$0 sps:$4 sm:$0x11]  }
 0x135   : > { %v824_v6 = vpop.permute.xlu1 %823  ;;  %2181 = vrot.lane.b32.xlu0 %v4862_v1, %s5295_s9  ;;  %v780_v1 = vshrl.u32 %v4882_v59, 16  ;;  %v2883_v3 = vsel %vm1044_vm0, %v2881_v57, %v2882_v60  ;;  %v4896_v60 = vld [vmem:[%s5544_s29 + $0x48] sm:$0xfe]  }
 0x136   : > { %862 = vst.msk [vmem:[#allocation2 + $0x50] sm:$0xff] %vm851_vm4, %v824_v6  ;;  %v782_v6 = vshll.u32 %v4882_v59, 16  ;;  %v2859_v8 = vsel %vm1044_vm0, %v2857_v0, %v2858_v4  ;;  %v4898_v4 = vld [vmem:[%s5544_s29 + $0xb4] sm:$0xfe]  }
 0x137   : > { %v808_v7 = vpop.permute.xlu0 %807  ;;  %2628 = vrot.lane.b32.xlu1 %v2567_v29, %s5296_s26  ;;  %v4888_v29 = vld [vmem:[%s5544_s29 + $0x54] sm:$0xfe]  }
 0x138   : > { %854 = vst.msk [vmem:[#allocation2 + $0x10] sm:$0xff] %vm851_vm4, %v808_v7  ;;  %v4884_v7 = vld [vmem:[%s5544_s29 + $0x48] sm:$0xff]   ;;  %v784_v9 = vrot.slane %v782_v6, 1  ;;  %v2860_v33 = vrot.slane %v4888_v29, 1 }
 0x139   : > { %v2912_v20 = vpop.permute.xlu1 %2911  ;;  %v2966_v21 = vld [vmem:[#allocation2 + $0x40] sm:$0xff]  ;;  %2612 = vrot.lane.b32.xlu0 %v2471_v37, %s5296_s26  ;;  %v684_v14 = vshrl.u32 %v4884_v7, 16  ;;  %v686_v15 = vshll.u32 %v4884_v7, 16 }
 0x13a   : > { %2951 = vst.msk [vmem:[#allocation2 + $0x48] sm:$0xff] %vm2941_vm11, %v2912_v20  ;;  %4562 = vmatprep.mubr.bf16.mxu1 %v2966_v21  ;;  %v785_v17 = vor.u32 %v784_v9, %v780_v1  ;;  %v4886_v20 = vld [vmem:[%s5544_s29 + $0xb4] sm:$0xfe]   ;;  %v1063_v1 = vrot.slane %v4896_v60, 1  ;;  %v1091_v9 = vrot.slane %v4899_v5, 1 }
 0x13b   : > { %v2896_v24 = vpop.permute.xlu0 %2895  ;;  %v2958_v25 = vld [vmem:[#allocation2] sm:$0xff]  ;;  %2630 = vrot.lane.b32.xlu1 %v2579_v50, %s5296_s26  ;;  %v4890_v21 = vld [vmem:[%s5544_s29 + $0xb4] sm:$0xff]   ;;  %v688_v11 = vrot.slane %v686_v15, 1  ;;  %v2884_v26 = vrot.slane %v4886_v20, 1  ;;  %v1067_v20 = vrot.slane %v4901_v12, 1 }
 0x13c   : > { %2943 = vst.msk [vmem:[#allocation2 + $0x8] sm:$0xff] %vm2941_vm11, %v2896_v24  ;;  %4546 = vmatprep.mubr.bf16.mxu0 %v2958_v25  ;;  %v790_v24 = vsel %vm610_vm1, %v785_v17, %v789_v18  ;;  %v693_v25 = vrot.slane %v691_v19, 1  ;;  %v792_v37 = vshrl.u32 %v4890_v21, 16  ;;  %v794_v38 = vshll.u32 %v4890_v21, 16  ;;  %v4902_v17 = vld [vmem:[%s5544_s29 + $0xb4] sm:$0xff]  }
 0x13d   : > { %v826_v36 = vpop.permute.xlu1 %825  ;;  %2614 = vrot.lane.b32.xlu0 %v2483_v54, %s5296_s26  ;;  %v689_v28 = vor.u32 %v688_v11, %v684_v14  ;;  %v2886_v63 = vsel %vm1044_vm0, %v2884_v26, %v2885_v22  ;;  %v705_v54 = vrot.slane %v703_v48, 1  ;;  %v4906_v14 = vld [vmem:[%s5544_s29 + $0xb4] sm:$0xff]   ;;  %v4915_v60 = vld [vmem:[%s5544_s29 + $0xbc] ss:$0 sps:$4 sm:$0x11]  }
 0x13e   : > { %863 = vst.msk [vmem:[#allocation2 + $0x58] sm:$0xff] %vm851_vm4, %v826_v36  ;;  %v4892_v36 = vld [vmem:[%s5544_s29 + $0x54] sm:$0xff]   ;;  %v796_v44 = vrot.slane %v794_v38, 1  ;;  %v1681_v21 = vshrl.u32 %v4906_v14, 16 }
 0x13f   : > { %v810_v40 = vpop.permute.xlu0 %809  ;;  %2917 = vrot.lane.b32.xlu1 %v2883_v3, %s5297_s10  ;;  %v694_v32 = vsel %vm610_vm1, %v689_v28, %v693_v25  ;;  %v696_v45 = vshrl.u32 %v4892_v36, 16  ;;  %v698_v46 = vshll.u32 %v4892_v36, 16  ;;  %v1064_v3 = vrot.slane %v4897_v61, 1  ;;  %v4908_v19 = vld [vmem:[%s5544_s29 + $0x54] sm:$0xff]  }
 0x140   : > { %855 = vst.msk [vmem:[#allocation2 + $0x18] sm:$0xff] %vm851_vm4, %v810_v40  ;;  %v2862_v40 = vsel %vm1044_vm0, %v2860_v33, %v2861_v34  ;;  %v4903_v11 = vld [vmem:[%s5544_s29 + $0x54] sm:$0xff]   ;;  %v1585_v25 = vshrl.u32 %v4908_v19, 16  ;;  %v4907_v28 = vld [vmem:[%s5544_s29 + $0xbc] ss:$0 sps:$4 sm:$0x11]  }
 0x141   : > { %v1114_v49 = vpop.permute.xlu1 %1113  ;;  %v2967_v53 = vld [vmem:[#allocation2 + $0x48] sm:$0xff]  ;;  %2901 = vrot.lane.b32.xlu0 %v2859_v8, %s5297_s10  ;;  %v700_v50 = vrot.slane %v698_v46, 1  ;;  %v1065_v7 = vsel %vm1044_vm0, %v1063_v1, %v1064_v3  ;;  %v1090_v8 = vrot.slane %v4898_v4, 1  ;;  %v1587_v22 = vshll.u32 %v4908_v19, 16  ;;  %v4912_v34 = vld [vmem:[%s5544_s29 + $0x60] sm:$0xff]  }
 0x142   : > { %1152 = vst.msk [vmem:[#allocation2 + $0x50] sm:$0xff] %vm1141_vm5, %v1114_v49  ;;  %4563 = vmatmul.mubr.bf16.vlgmr.msra.gmra.mrb[0].mxu1 %v2967_v53  ;;  %v797_v49 = vor.u32 %v796_v44, %v792_v37  ;;  %v4905_v37 = vld [vmem:[%s5544_s29 + $0x60] sm:$0xff]   ;;  %v1599_v48 = vshll.u32 %v4912_v34, 16  ;;  %v4916_v3 = vld [vmem:[%s5544_s29 + $0x54] sm:$0xfe]  }
 0x143   : > { %v1098_v52 = vpop.permute.xlu0 %1097  ;;  %v2959_v56 = vld [vmem:[#allocation2 + $0x8] sm:$0xff]  ;;  %831 = vrot.lane.b32.xlu1 %v790_v24, %s5292_s27  ;;  %v701_v57 = vor.u32 %v700_v50, %v696_v45  ;;  %v1092_v15 = vsel %vm1044_vm0, %v1090_v8, %v1091_v9  ;;  %v1683_v24 = vshll.u32 %v4906_v14, 16  ;;  %v1589_v33 = vrot.slane %v1587_v22, 1  ;;  %v4917_v5 = vld [vmem:[%s5544_s29 + $0x5c] ss:$0 sps:$4 sm:$0x11]  }
 0x144   : > { %1144 = vst.msk [vmem:[#allocation2 + $0x10] sm:$0xff] %vm1141_vm5, %v1098_v52  ;;  %4547 = vmatmul.mubr.bf16.vlgmr.msra.gmra.mrb[0].mxu0 %v2959_v56  ;;  %v4895_v52 = vld [vmem:[%s5544_s29 + $0xb0] ss:$0 sps:$4 sm:$0x11]   ;;  %v802_v56 = vsel %vm610_vm1, %v797_v49, %v801_v47  ;;  %v1597_v47 = vshrl.u32 %v4912_v34, 16  ;;  %v1963_v8 = vrot.slane %v4916_v3, 1 }
 0x145   : > { %v1116_v62 = vpop.permute.xlu1 %1115  ;;  %815 = vrot.lane.b32.xlu0 %v694_v32, %s5292_s27  ;;  %v1088_v59 = vrot.slane %v4895_v52, 1  ;;  %v1685_v30 = vrot.slane %v1683_v24, 1  ;;  %v1688_v32 = vshll.u32 %v4907_v28, 16  ;;  %v1590_v42 = vor.u32 %v1589_v33, %v1585_v25  ;;  %v4919_v12 = vld [vmem:[%s5544_s29 + $0xc8] ss:$0 sps:$4 sm:$0x11]  }
 0x146   : > { %1153 = vst.msk [vmem:[#allocation2 + $0x58] sm:$0xff] %vm1141_vm5, %v1116_v62  ;;  %v706_v62 = vsel %vm610_vm1, %v701_v57, %v705_v54  ;;  %v1601_v54 = vrot.slane %v1599_v48, 1  ;;  %v1964_v9 = vrot.slane %v4917_v5, 1  ;;  %v4922_v28 = vld [vmem:[%s5544_s29 + $0xc0] sm:$0xff]  }
 0x147   : > { %v1100_v2 = vpop.permute.xlu0 %1099  ;;  %2919 = vrot.lane.b32.xlu1 %v2886_v63, %s5297_s10  ;;  %v1089_v0 = vsel %vm1044_vm0, %v1087_v58, %v1088_v59  ;;  %v4909_v63 = vld [vmem:[%s5544_s29 + $0x5c] ss:$0 sps:$4 sm:$0x11]   ;;  %v1686_v35 = vor.u32 %v1685_v30, %v1681_v21  ;;  %v1690_v38 = vrot.slane %v1688_v32, 1  ;;  %v1604_v58 = vshll.u32 %v4913_v51, 16  ;;  %v4926_v21 = vld [vmem:[%s5544_s29 + $0x90] sm:$0xff]  }
 0x148   : > { %1145 = vst.msk [vmem:[#allocation2 + $0x18] sm:$0xff] %vm1141_vm5, %v1100_v2  ;;  %v4914_v59 = vld [vmem:[%s5544_s29 + $0xb4] sm:$0xfe]   ;;  %v1602_v61 = vor.u32 %v1601_v54, %v1597_v47  ;;  %v1965_v19 = vsel %vm1044_vm0, %v1963_v8, %v1964_v9  ;;  %v4923_v30 = vld [vmem:[%s5544_s29 + $0x60] sm:$0xff]   ;;  %v4934_v51 = vld [vmem:[%s5544_s29 + $0x6c] sm:$0xff]  }
 0x149   : > { %v1292_v13 = vpop.permute.xlu1 %1291  ;;  %2903 = vrot.lane.b32.xlu0 %v2862_v40, %s5297_s10  ;;  %v4911_v40 = vld [vmem:[%s5544_s29 + $0xc8] ss:$0 sps:$4 sm:$0x11]   ;;  %v1691_v49 = vsel %vm610_vm1, %v1686_v35, %v1690_v38  ;;  %v1987_v1 = vrot.slane %v4914_v59, 1  ;;  %430 = vst.msk [vmem:[#allocation2 + $0x60] sm:$0xff] %vm417_vm3, %v4926_v21  ;;  %v4930_v33 = vld [vmem:[%s5544_s29 + $0x60] sm:$0xff]  }
 0x14a   : > { %1330 = vst.msk [vmem:[#allocation2 + $0x50] sm:$0xff] %vm1319_vm6, %v1292_v13  ;;  %v1700_v46 = vshll.u32 %v4911_v40, 16  ;;  %v4925_v40 = vld [vmem:[%s5544_s29 + $0x6c] sm:$0xff]   ;;  %v4936_v54 = vld [vmem:[%s5544_s29 + $0x9c] sm:$0xff]  }
 0x14b   : > { %v1276_v16 = vpop.permute.xlu0 %1275  ;;  %833 = vrot.lane.b32.xlu1 %v802_v56, %s5292_s27  ;;  %v4937_v59 = vld [vmem:[%s5544_s29 + $0x3c] sm:$0xff]   ;;  %431 = vst.msk [vmem:[#allocation2 + $0x68] sm:$0xff] %vm417_vm3, %v4936_v54 }
 0x14c   : > { %1322 = vst.msk [vmem:[#allocation2 + $0x10] sm:$0xff] %vm1319_vm6, %v1276_v16  ;;  %v1066_v16 = vrot.slane %v4900_v10, 1  ;;  %v4918_v10 = vld [vmem:[%s5544_s29 + $0xc0] sm:$0xfe]  }
 0x14d   : > { %v1294_v27 = vpop.permute.xlu1 %1293  ;;  %817 = vrot.lane.b32.xlu0 %v706_v62, %s5292_s27  ;;  %423 = vst.msk [vmem:[#allocation2 + $0x28] sm:$0xff] %vm417_vm3, %v4937_v59  ;;  %v4940_v21 = vld [vmem:[%s5544_s29 + $0x60] sm:$0xfe]  }
 0x14e   : > { %1331 = vst.msk [vmem:[#allocation2 + $0x58] sm:$0xff] %vm1319_vm6, %v1294_v27  ;;  %v1068_v23 = vsel %vm1044_vm0, %v1066_v16, %v1067_v20  ;;  %v4904_v27 = vld [vmem:[%s5544_s29 + $0xc0] sm:$0xff]   ;;  %v1991_v16 = vrot.slane %v4919_v12, 1  ;;  %v4921_v20 = vld [vmem:[%s5544_s29 + $0x68] ss:$0 sps:$4 sm:$0x11]  }
 0x14f   : > { %v1278_v31 = vpop.permute.xlu0 %1277  ;;  %1121 = vrot.lane.b32.xlu1 %v1089_v0, %s5291_s23  ;;  %v1606_v0 = vrot.slane %v1604_v58, 1  ;;  %v1967_v25 = vrot.slane %v4921_v20, 1 }
 0x150   : > { %1323 = vst.msk [vmem:[#allocation2 + $0x18] sm:$0xff] %vm1319_vm6, %v1278_v31  ;;  %v4910_v31 = vld [vmem:[%s5544_s29 + $0xc0] sm:$0xff]  }
 0x151   : > { %v1725_v39 = vpop.permute.xlu1 %1724  ;;  %1105 = vrot.lane.b32.xlu0 %v1065_v7, %s5291_s23  ;;  %v1695_v44 = vshll.u32 %v4910_v31, 16  ;;  %v1607_v7 = vsel %vm610_vm1, %v1602_v61, %v1606_v0  ;;  %v4935_v61 = vld [vmem:[%s5544_s29 + $0x74] ss:$0 sps:$4 sm:$0x11]   ;;  %v2499_v0 = vshll.u32 %v4934_v51, 16 }
 0x152   : > { %1763 = vst.msk [vmem:[#allocation2 + $0x50] sm:$0xff] %vm1752_vm7, %v1725_v39  ;;  %v1592_v39 = vshll.u32 %v4909_v63, 16  ;;  %v2504_v8 = vshll.u32 %v4935_v61, 16 }
 0x153   : > { %v1709_v43 = vpop.permute.xlu0 %1708  ;;  %1123 = vrot.lane.b32.xlu1 %v1092_v15, %s5291_s23  ;;  %v1697_v50 = vrot.slane %v1695_v44, 1  ;;  %v1990_v15 = vrot.slane %v4918_v10, 1 }
 0x154   : > { %1755 = vst.msk [vmem:[#allocation2 + $0x10] sm:$0xff] %vm1752_vm7, %v1709_v43  ;;  %v1693_v43 = vshrl.u32 %v4910_v31, 16  ;;  %v1594_v45 = vrot.slane %v1592_v39, 1  ;;  %v4929_v31 = vld [vmem:[%s5544_s29 + $0xc8] ss:$0 sps:$4 sm:$0x11]  }
 0x155   : > { %v1727_v53 = vpop.permute.xlu1 %1726  ;;  %1107 = vrot.lane.b32.xlu0 %v1068_v23, %s5291_s23  ;;  %v4927_v23 = vld [vmem:[%s5544_s29 + $0x30] sm:$0xff]   ;;  %v1992_v24 = vsel %vm1044_vm0, %v1990_v15, %v1991_v16  ;;  %v2588_v38 = vshll.u32 %v4929_v31, 16  ;;  %v4931_v39 = vld [vmem:[%s5544_s29 + $0x68] ss:$0 sps:$4 sm:$0x11]   ;;  %v2506_v12 = vrot.slane %v2504_v8, 1 }
 0x156   : > { %1764 = vst.msk [vmem:[#allocation2 + $0x58] sm:$0xff] %vm1752_vm7, %v1727_v53  ;;  %v1702_v53 = vrot.slane %v1700_v46, 1  ;;  %v1595_v56 = vsel %vm610_vm1, %v1590_v42, %v1594_v45  ;;  %v1698_v57 = vor.u32 %v1697_v50, %v1693_v43  ;;  %v2487_v42 = vshll.u32 %v4930_v33, 16  ;;  %v4933_v50 = vld [vmem:[%s5544_s29 + $0xd4] ss:$0 sps:$4 sm:$0x11]  }
 0x157   : > { %v1711_v55 = vpop.permute.xlu0 %1710  ;;  %1299 = vrot.lane.b32.xlu1 %v4902_v17, %s5290_s25  ;;  %v4920_v17 = vld [vmem:[%s5544_s29 + $0x60] sm:$0xfe]   ;;  %422 = vst.msk [vmem:[#allocation2 + $0x20] sm:$0xff] %vm417_vm3, %v4927_v23  ;;  %v2590_v46 = vrot.slane %v2588_v38, 1  ;;  %v2492_v47 = vshll.u32 %v4931_v39, 16  ;;  %v2600_v58 = vshll.u32 %v4933_v50, 16 }
 0x158   : > { %1756 = vst.msk [vmem:[#allocation2 + $0x18] sm:$0xff] %vm1752_vm7, %v1711_v55  ;;  %v1703_v62 = vsel %vm610_vm1, %v1698_v57, %v1702_v53  ;;  %v2489_v48 = vrot.slane %v2487_v42, 1  ;;  %v4946_v23 = vld [vmem:[%s5544_s29 + $0xa8] sm:$0xff]   ;;  %v4943_v31 = vld [vmem:[%s5544_s29 + $0xd4] ss:$0 sps:$4 sm:$0x11]  }
 0x159   : > { %v2014_v2 = vpop.permute.xlu1 %2013  ;;  %1283 = vrot.lane.b32.xlu0 %v4903_v11, %s5290_s25  ;;  %v1966_v11 = vrot.slane %v4920_v17, 1  ;;  %v2494_v53 = vrot.slane %v2492_v47, 1  ;;  %432 = vst.msk [vmem:[#allocation2 + $0x70] sm:$0xff] %vm417_vm3, %v4946_v23  ;;  %v4949_v38 = vld [vmem:[%s5544_s29 + $0x54] sm:$0xff]  }
 0x15a   : > { %2052 = vst.msk [vmem:[#allocation2 + $0x50] sm:$0xff] %vm2041_vm8, %v2014_v2  ;;  %v1988_v2 = vrot.slane %v4915_v60, 1 }
 0x15b   : > { %v1998_v6 = vpop.permute.xlu0 %1997  ;;  %1301 = vrot.lane.b32.xlu1 %v4904_v27, %s5290_s25  ;;  %v4928_v27 = vld [vmem:[%s5544_s29 + $0xc0] sm:$0xff]   ;;  %425 = vst.msk [vmem:[#allocation2 + $0x38] sm:$0xff] %vm417_vm3, %v4949_v38 }
 0x15c   : > { %2044 = vst.msk [vmem:[#allocation2 + $0x10] sm:$0xff] %vm2041_vm8, %v1998_v6  ;;  %v2581_v32 = vshrl.u32 %v4928_v27, 16  ;;  %v2583_v63 = vshll.u32 %v4928_v27, 16  ;;  %v2863_v27 = vrot.slane %v4940_v21, 1 }
 0x15d   : > { %v2016_v13 = vpop.permute.xlu1 %2015  ;;  %1285 = vrot.lane.b32.xlu0 %v4905_v37, %s5290_s25  ;;  %s5299_s25 = smov [#allocation11]  }
 0x15e   : > { %2053 = vst.msk [vmem:[#allocation2 + $0x58] sm:$0xff] %vm2041_vm8, %v2016_v13  ;;  %v1989_v13 = vsel %vm1044_vm0, %v1987_v1, %v1988_v2  ;;  %v2585_v37 = vrot.slane %v2583_v63, 1  ;;  %s5196_s23 = sshll.u32 %s5299_s25, 4  ;;  %s5197_s23 = int_to_ptr.vmem [resolvable:$false] %s5196_s23 }
 0x15f   : > { %v2000_v18 = vpop.permute.xlu0 %1999  ;;  %1732 = vrot.lane.b32.xlu1 %v1691_v49, %s5293_s7  ;;  %v4932_v49 = vld [vmem:[%s5544_s29 + $0xcc] sm:$0xff]   ;;  %p5199_p5 = scmp.lt.s32.totalorder %s6317_s5, %s5197_s23 }
 0x160   : > { %2045 = vst.msk [vmem:[#allocation2 + $0x18] sm:$0xff] %vm2041_vm8, %v2000_v18  ;;  %v2586_v45 = vor.u32 %v2585_v37, %v2581_v32  ;;  %v2595_v57 = vshll.u32 %v4932_v49, 16 }
 0x161   : > { %v2192_v26 = vpop.permute.xlu1 %2191  ;;  %1716 = vrot.lane.b32.xlu0 %v1595_v56, %s5293_s7  ;;  %v2593_v56 = vshrl.u32 %v4932_v49, 16 }
 0x162   : > { %2230 = vst.msk [vmem:[#allocation2 + $0x50] sm:$0xff] %vm2219_vm9, %v2192_v26  ;;  %v2591_v60 = vsel %vm610_vm1, %v2586_v45, %v2590_v46  ;;  %v2597_v3 = vrot.slane %v2595_v57, 1 }
 0x163   : > { %v2176_v29 = vpop.permute.xlu0 %2175  ;;  %1734 = vrot.lane.b32.xlu1 %v1703_v62, %s5293_s7  ;;  %v2497_v62 = vshrl.u32 %v4934_v51, 16 }
 0x164   : > { %2222 = vst.msk [vmem:[#allocation2 + $0x10] sm:$0xff] %vm2219_vm9, %v2176_v29  ;;  %v1968_v29 = vsel %vm1044_vm0, %v1966_v11, %v1967_v25  ;;  %v2598_v9 = vor.u32 %v2597_v3, %v2593_v56  ;;  %v4947_v25 = vld [vmem:[%s5544_s29 + $0x48] sm:$0xff]  }
 0x165   : > { %v2194_v36 = vpop.permute.xlu1 %2193  ;;  %1718 = vrot.lane.b32.xlu0 %v1607_v7, %s5293_s7  ;;  %v2501_v7 = vrot.slane %v2499_v0, 1  ;;  %424 = vst.msk [vmem:[#allocation2 + $0x30] sm:$0xff] %vm417_vm3, %v4947_v25  ;;  %s5198_s7 = scalar_lea.vmem %s5197_s23, 4096 }
 0x166   : > { %2231 = vst.msk [vmem:[#allocation2 + $0x58] sm:$0xff] %vm2219_vm9, %v2194_v36  ;;  %v4924_v36 = vld [vmem:[%s5544_s29 + $0xcc] sm:$0xff]  }
 0x167   : > { %v2178_v41 = vpop.permute.xlu0 %2177  ;;  %2021 = vrot.lane.b32.xlu1 %v1989_v13, %s5294_s22  ;;  %v2502_v10 = vor.u32 %v2501_v7, %v2497_v62  ;;  %v4938_v13 = vld [vmem:[%s5544_s29 + $0xc0] sm:$0xfe]  }
 0x168   : > { %2223 = vst.msk [vmem:[#allocation2 + $0x18] sm:$0xff] %vm2219_vm9, %v2178_v41  ;;  %v2485_v41 = vshrl.u32 %v4930_v33, 16 }
 0x169   : > { %v2625_v52 = vpop.permute.xlu1 %2624  ;;  %2005 = vrot.lane.b32.xlu0 %v1965_v19, %s5294_s22  ;;  %v2887_v19 = vrot.slane %v4938_v13, 1 }
 0x16a   : > { %2663 = vst.msk [vmem:[#allocation2 + $0x50] sm:$0xff] %vm2652_vm10, %v2625_v52 }
 0x16b   : > { %v2609_v55 = vpop.permute.xlu0 %2608  ;;  %2023 = vrot.lane.b32.xlu1 %v1992_v24, %s5294_s22  ;;  %v4941_v24 = vld [vmem:[%s5544_s29 + $0x68] ss:$0 sps:$4 sm:$0x11]  }
 0x16c   : > { %2655 = vst.msk [vmem:[#allocation2 + $0x10] sm:$0xff] %vm2652_vm10, %v2609_v55  ;;  %v2490_v55 = vor.u32 %v2489_v48, %v2485_v41 }
 0x16d   : > { %v2627_v4 = vpop.permute.xlu1 %2626  ;;  %2007 = vrot.lane.b32.xlu0 %v1968_v29, %s5294_s22  ;;  %v2864_v29 = vrot.slane %v4941_v24, 1 }
 0x16e   : > { %2664 = vst.msk [vmem:[#allocation2 + $0x58] sm:$0xff] %vm2652_vm10, %v2627_v4  ;;  %v2602_v4 = vrot.slane %v2600_v58, 1 }
 0x16f   : > { %v2611_v6 = vpop.permute.xlu0 %2610  ;;  %2199 = vrot.lane.b32.xlu1 %v4922_v28, %s5295_s9  ;;  %v2865_v63 = vsel %vm1044_vm0, %v2863_v27, %v2864_v29 }
 0x170   : > { %2656 = vst.msk [vmem:[#allocation2 + $0x18] sm:$0xff] %vm2652_vm10, %v2611_v6  ;;  %v2495_v6 = vsel %vm610_vm1, %v2490_v55, %v2494_v53  ;;  %v2603_v16 = vsel %vm610_vm1, %v2598_v9, %v2602_v4 }
 0x171   : > { %v2914_v14 = vpop.permute.xlu1 %2913  ;;  %2183 = vrot.lane.b32.xlu0 %v4923_v30, %s5295_s9  ;;  %v4942_v30 = vld [vmem:[%s5544_s29 + $0xcc] sm:$0xfe]  }
 0x172   : > { %2952 = vst.msk [vmem:[#allocation2 + $0x50] sm:$0xff] %vm2941_vm11, %v2914_v14  ;;  %v4939_v14 = vld [vmem:[%s5544_s29 + $0xc8] ss:$0 sps:$4 sm:$0x11]   ;;  %v2890_v33 = vrot.slane %v4942_v30, 1 }
 0x173   : > { %v2898_v18 = vpop.permute.xlu0 %2897  ;;  %2201 = vrot.lane.b32.xlu1 %v4924_v36, %s5295_s9  ;;  %v2888_v20 = vrot.slane %v4939_v14, 1  ;;  %v4945_v36 = vld [vmem:[%s5544_s29 + $0x74] ss:$0 sps:$4 sm:$0x11]  }
 0x174   : > { %2944 = vst.msk [vmem:[#allocation2 + $0x10] sm:$0xff] %vm2941_vm11, %v2898_v18  ;;  %v2507_v18 = vsel %vm610_vm1, %v2502_v10, %v2506_v12  ;;  %v2867_v42 = vrot.slane %v4945_v36, 1 }
 0x175   : > { %v828_v26 = vpop.permute.xlu1 %827  ;;  %2185 = vrot.lane.b32.xlu0 %v4925_v40, %s5295_s9 }
 0x176   : > { %864 = vst.msk [vmem:[#allocation2 + $0x60] sm:$0xff] %vm851_vm4, %v828_v26  ;;  %v2889_v26 = vsel %vm1044_vm0, %v2887_v19, %v2888_v20 }
 0x177   : > { %v812_v22 = vpop.permute.xlu0 %811  ;;  %2632 = vrot.lane.b32.xlu1 %v2591_v60, %s5296_s26 }
 0x178   : > { %856 = vst.msk [vmem:[#allocation2 + $0x20] sm:$0xff] %vm851_vm4, %v812_v22  ;;  %v4948_v22 = vld [vmem:[%s5544_s29 + $0xb4] sm:$0xff]  }
 0x179   : > { %v2916_v34 = vpop.permute.xlu1 %2915  ;;  %v2968_v44 = vld [vmem:[#allocation2 + $0x50] sm:$0xff]  ;;  %2616 = vrot.lane.b32.xlu0 %v2495_v6, %s5296_s26  ;;  %433 = vst.msk [vmem:[#allocation2 + $0x78] sm:$0xff] %vm417_vm3, %v4948_v22 }
 0x17a   : > { %2953 = vst.msk [vmem:[#allocation2 + $0x58] sm:$0xff] %vm2941_vm11, %v2916_v34  ;;  %4566 = vmatprep.mubr.bf16.mxu1 %v2968_v44  ;;  %v2891_v34 = vrot.slane %v4943_v31, 1 }
 0x17b   : > { %v2900_v35 = vpop.permute.xlu0 %2899  ;;  %v2960_v43 = vld [vmem:[#allocation2 + $0x10] sm:$0xff]  ;;  %2634 = vrot.lane.b32.xlu1 %v2603_v16, %s5296_s26 }
 0x17c   : > { %2945 = vst.msk [vmem:[#allocation2 + $0x18] sm:$0xff] %vm2941_vm11, %v2900_v35  ;;  %4550 = vmatprep.mubr.bf16.mxu0 %v2960_v43  ;;  %v4944_v35 = vld [vmem:[%s5544_s29 + $0x6c] sm:$0xfe]   ;;  %v2892_v39 = vsel %vm1044_vm0, %v2890_v33, %v2891_v34  ;;  %s5192_s29 = scalar_lea.vmem %s6317_s5, 2048 }
 0x17d   : > { %v830_v52 = vpop.permute.xlu1 %829  ;;  %2618 = vrot.lane.b32.xlu0 %v2507_v18, %s5296_s26  ;;  %v2866_v40 = vrot.slane %v4944_v35, 1  ;;  %p5193_p13 = scmp.ne.s32.totalorder %s6317_s5, %s5192_s29  ;;  %p5200_p7 = scmp.lt.s32.totalorder %s5198_s7, %s5192_s29 }
 0x17e   : > { %865 = vst.msk [vmem:[#allocation2 + $0x68] sm:$0xff] %vm851_vm4, %v830_v52 }
 0x17f   : > { %v814_v1 = vpop.permute.xlu0 %813  ;;  %2921 = vrot.lane.b32.xlu1 %v2889_v26, %s5297_s10  ;;  %v2868_v43 = vsel %vm1044_vm0, %v2866_v40, %v2867_v42  ;;  %p5194_p6 = pnand %p5193_p13, %p5481_p10  ;;  %p5201_p9 = por %p5200_p7, %p5199_p5 }
 0x180   : > { %857 = vst.msk [vmem:[#allocation2 + $0x28] sm:$0xff] %vm851_vm4, %v814_v1 }
 0x181   : > { %v2969_v2 = vld [vmem:[#allocation2 + $0x58] sm:$0xff]  ;;  %v1118_v5 = vpop.permute.xlu1 %1117  ;;  %2905 = vrot.lane.b32.xlu0 %v2865_v63, %s5297_s10  ;;  %p5195_p3 = pneg %p5194_p6 }
 0x182   : > { %4567 = vmatmul.mubr.bf16.gmra.mrb[4].mxu1 %v2969_v2  ;;  %1154 = vst.msk [vmem:[#allocation2 + $0x60] sm:$0xff] %vm1141_vm5, %v1118_v5 }
 0x183   : > { %v1102_v15 = vpop.permute.xlu0 %1101  ;;  %v2961_v11 = vld [vmem:[#allocation2 + $0x18] sm:$0xff]  ;;  %2923 = vrot.lane.b32.xlu1 %v2892_v39, %s5297_s10  ;;  %p5202_p0 = pnand %p5201_p9, %p5195_p3 }
 0x184   : > { %1146 = vst.msk [vmem:[#allocation2 + $0x20] sm:$0xff] %vm1141_vm5, %v1102_v15  ;;  %4551 = vmatmul.mubr.bf16.gmra.mrb[4].mxu0 %v2961_v11 }
 0x185   : > { %v1120_v17 = vpop.permute.xlu1 %1119  ;;  %2907 = vrot.lane.b32.xlu0 %v2868_v43, %s5297_s10  ;;  %v6203_v43 = vld [vmem:[#allocation9] ss:$0 sm:$0xff] }
 0x186   : > { %1155 = vst.msk [vmem:[#allocation2 + $0x68] sm:$0xff] %vm1141_vm5, %v1120_v17 }
 0x187   : > { %v1104_v28 = vpop.permute.xlu0 %1103 }
 0x188   : > { %1147 = vst.msk [vmem:[#allocation2 + $0x28] sm:$0xff] %vm1141_vm5, %v1104_v28 }
 0x189   : > { %v1296_v32 = vpop.permute.xlu1 %1295 }
 0x18a   : > { %1332 = vst.msk [vmem:[#allocation2 + $0x60] sm:$0xff] %vm1319_vm6, %v1296_v32 }
 0x18b   : > { %v1280_v37 = vpop.permute.xlu0 %1279 }
 0x18c   : > { %1324 = vst.msk [vmem:[#allocation2 + $0x20] sm:$0xff] %vm1319_vm6, %v1280_v37 }
 0x18d   : > { %v1298_v41 = vpop.permute.xlu1 %1297 }
 0x18e   : > { %1333 = vst.msk [vmem:[#allocation2 + $0x68] sm:$0xff] %vm1319_vm6, %v1298_v41  ;;  %v6201_v41 = vld [vmem:[#allocation8] ss:$0 sm:$0xff] }
 0x18f   : > { %v1282_v44 = vpop.permute.xlu0 %1281 }
 0x190   : > { %1325 = vst.msk [vmem:[#allocation2 + $0x28] sm:$0xff] %vm1319_vm6, %v1282_v44 }
 0x191   : > { %v1729_v45 = vpop.permute.xlu1 %1728 }
 0x192   : > { %1765 = vst.msk [vmem:[#allocation2 + $0x60] sm:$0xff] %vm1752_vm7, %v1729_v45 }
 0x193   : > { %v1713_v46 = vpop.permute.xlu0 %1712 }
 0x194   : > { %1757 = vst.msk [vmem:[#allocation2 + $0x20] sm:$0xff] %vm1752_vm7, %v1713_v46 }
 0x195   : > { %v1731_v47 = vpop.permute.xlu1 %1730 }
 0x196   : > { %1766 = vst.msk [vmem:[#allocation2 + $0x68] sm:$0xff] %vm1752_vm7, %v1731_v47 }
 0x197   : > { %v1715_v48 = vpop.permute.xlu0 %1714 }
 0x198   : > { %1758 = vst.msk [vmem:[#allocation2 + $0x28] sm:$0xff] %vm1752_vm7, %v1715_v48 }
 0x199   : > { %v2018_v49 = vpop.permute.xlu1 %2017 }
 0x19a   : > { %2054 = vst.msk [vmem:[#allocation2 + $0x60] sm:$0xff] %vm2041_vm8, %v2018_v49 }
 0x19b   : > { %v2002_v50 = vpop.permute.xlu0 %2001 }
 0x19c   : > { %2046 = vst.msk [vmem:[#allocation2 + $0x20] sm:$0xff] %vm2041_vm8, %v2002_v50 }
 0x19d   : > { %v2020_v51 = vpop.permute.xlu1 %2019 }
 0x19e   : > { %2055 = vst.msk [vmem:[#allocation2 + $0x68] sm:$0xff] %vm2041_vm8, %v2020_v51 }
 0x19f   : > { %v2004_v52 = vpop.permute.xlu0 %2003 }
 0x1a0   : > { %2047 = vst.msk [vmem:[#allocation2 + $0x28] sm:$0xff] %vm2041_vm8, %v2004_v52 }
 0x1a1   : > { %v2196_v53 = vpop.permute.xlu1 %2195 }
 0x1a2   : > { %2232 = vst.msk [vmem:[#allocation2 + $0x60] sm:$0xff] %vm2219_vm9, %v2196_v53 }
 0x1a3   : > { %v2180_v54 = vpop.permute.xlu0 %2179 }
 0x1a4   : > { %2224 = vst.msk [vmem:[#allocation2 + $0x20] sm:$0xff] %vm2219_vm9, %v2180_v54 }
 0x1a5   : > { %v2198_v55 = vpop.permute.xlu1 %2197 }
 0x1a6   : > { %2233 = vst.msk [vmem:[#allocation2 + $0x68] sm:$0xff] %vm2219_vm9, %v2198_v55 }
 0x1a7   : > { %v2182_v56 = vpop.permute.xlu0 %2181 }
 0x1a8   : > { %2225 = vst.msk [vmem:[#allocation2 + $0x28] sm:$0xff] %vm2219_vm9, %v2182_v56 }
 0x1a9   : > { %v2629_v57 = vpop.permute.xlu1 %2628 }
 0x1aa   : > { %2665 = vst.msk [vmem:[#allocation2 + $0x60] sm:$0xff] %vm2652_vm10, %v2629_v57 }
 0x1ab   : > { %v2613_v58 = vpop.permute.xlu0 %2612 }
 0x1ac   : > { %2657 = vst.msk [vmem:[#allocation2 + $0x20] sm:$0xff] %vm2652_vm10, %v2613_v58 }
 0x1ad   : > { %v2631_v59 = vpop.permute.xlu1 %2630 }
 0x1ae   : > { %2666 = vst.msk [vmem:[#allocation2 + $0x68] sm:$0xff] %vm2652_vm10, %v2631_v59 }
 0x1af   : > { %v2615_v60 = vpop.permute.xlu0 %2614 }
 0x1b0   : > { %2658 = vst.msk [vmem:[#allocation2 + $0x28] sm:$0xff] %vm2652_vm10, %v2615_v60 }
 0x1b1   : > { %v2918_v61 = vpop.permute.xlu1 %2917 }
 0x1b2   : > { %2954 = vst.msk [vmem:[#allocation2 + $0x60] sm:$0xff] %vm2941_vm11, %v2918_v61 }
 0x1b3   : > { %v2902_v62 = vpop.permute.xlu0 %2901 }
 0x1b4   : > { %2946 = vst.msk [vmem:[#allocation2 + $0x20] sm:$0xff] %vm2941_vm11, %v2902_v62 }
 0x1b5   : > { %v832_v0 = vpop.permute.xlu1 %831 }
 0x1b6   : > { %866 = vst.msk [vmem:[#allocation2 + $0x70] sm:$0xff] %vm851_vm4, %v832_v0 }
 0x1b7   : > { %v816_v2 = vpop.permute.xlu0 %815 }
 0x1b8   : > { %858 = vst.msk [vmem:[#allocation2 + $0x30] sm:$0xff] %vm851_vm4, %v816_v2 }
 0x1b9   : > { %v2970_v1 = vld [vmem:[#allocation2 + $0x60] sm:$0xff]  ;;  %v2920_v3 = vpop.permute.xlu1 %2919 }
 0x1ba   : > { %4570 = vmatprep.mubr.bf16.mxu1 %v2970_v1  ;;  %2955 = vst.msk [vmem:[#allocation2 + $0x68] sm:$0xff] %vm2941_vm11, %v2920_v3 }
 0x1bb   : > { %v2962_v4 = vld [vmem:[#allocation2 + $0x20] sm:$0xff]  ;;  %v2904_v5 = vpop.permute.xlu0 %2903 }
 0x1bc   : > { %4554 = vmatprep.mubr.bf16.mxu0 %v2962_v4  ;;  %2947 = vst.msk [vmem:[#allocation2 + $0x28] sm:$0xff] %vm2941_vm11, %v2904_v5 }
 0x1bd   : > { %v834_v6 = vpop.permute.xlu1 %833 }
 0x1be   : > { %867 = vst.msk [vmem:[#allocation2 + $0x78] sm:$0xff] %vm851_vm4, %v834_v6 }
 0x1bf   : > { %v818_v7 = vpop.permute.xlu0 %817 }
 0x1c0   : > { %859 = vst.msk [vmem:[#allocation2 + $0x38] sm:$0xff] %vm851_vm4, %v818_v7 }
 0x1c1   : > { %v2971_v8 = vld [vmem:[#allocation2 + $0x68] sm:$0xff]  ;;  %v1122_v9 = vpop.permute.xlu1 %1121 }
 0x1c2   : > { %4571 = vmatmul.mubr.bf16.gmra.mrb[8].mxu1 %v2971_v8  ;;  %1156 = vst.msk [vmem:[#allocation2 + $0x70] sm:$0xff] %vm1141_vm5, %v1122_v9 }
 0x1c3   : > { %v2963_v10 = vld [vmem:[#allocation2 + $0x28] sm:$0xff]  ;;  %v1106_v12 = vpop.permute.xlu0 %1105 }
 0x1c4   : > { %4555 = vmatmul.mubr.bf16.gmra.mrb[8].mxu0 %v2963_v10  ;;  %1148 = vst.msk [vmem:[#allocation2 + $0x30] sm:$0xff] %vm1141_vm5, %v1106_v12 }
 0x1c5   : > { %v1124_v13 = vpop.permute.xlu1 %1123 }
 0x1c6   : > { %1157 = vst.msk [vmem:[#allocation2 + $0x78] sm:$0xff] %vm1141_vm5, %v1124_v13 }
 0x1c7   : > { %v1108_v14 = vpop.permute.xlu0 %1107 }
 0x1c8   : > { %1149 = vst.msk [vmem:[#allocation2 + $0x38] sm:$0xff] %vm1141_vm5, %v1108_v14 }
 0x1c9   : > { %v1300_v15 = vpop.permute.xlu1 %1299 }
 0x1ca   : > { %1334 = vst.msk [vmem:[#allocation2 + $0x70] sm:$0xff] %vm1319_vm6, %v1300_v15 }
 0x1cb   : > { %v1284_v16 = vpop.permute.xlu0 %1283 }
 0x1cc   : > { %1326 = vst.msk [vmem:[#allocation2 + $0x30] sm:$0xff] %vm1319_vm6, %v1284_v16 }
 0x1cd   : > { %v1302_v17 = vpop.permute.xlu1 %1301 }
 0x1ce   : > { %1335 = vst.msk [vmem:[#allocation2 + $0x78] sm:$0xff] %vm1319_vm6, %v1302_v17 }
 0x1cf   : > { %v1286_v18 = vpop.permute.xlu0 %1285 }
 0x1d0   : > { %1327 = vst.msk [vmem:[#allocation2 + $0x38] sm:$0xff] %vm1319_vm6, %v1286_v18 }
 0x1d1   : > { %v1733_v19 = vpop.permute.xlu1 %1732 }
 0x1d2   : > { %1767 = vst.msk [vmem:[#allocation2 + $0x70] sm:$0xff] %vm1752_vm7, %v1733_v19 }
 0x1d3   : > { %v1717_v20 = vpop.permute.xlu0 %1716 }
 0x1d4   : > { %1759 = vst.msk [vmem:[#allocation2 + $0x30] sm:$0xff] %vm1752_vm7, %v1717_v20 }
 0x1d5   : > { %v1735_v21 = vpop.permute.xlu1 %1734 }
 0x1d6   : > { %1768 = vst.msk [vmem:[#allocation2 + $0x78] sm:$0xff] %vm1752_vm7, %v1735_v21 }
 0x1d7   : > { %v1719_v11 = vpop.permute.xlu0 %1718 }
 0x1d8   : > { %1760 = vst.msk [vmem:[#allocation2 + $0x38] sm:$0xff] %vm1752_vm7, %v1719_v11 }
 0x1d9   : > { %v2022_v23 = vpop.permute.xlu1 %2021 }
 0x1da   : > { %2056 = vst.msk [vmem:[#allocation2 + $0x70] sm:$0xff] %vm2041_vm8, %v2022_v23 }
 0x1db   : > { %v2006_v24 = vpop.permute.xlu0 %2005 }
 0x1dc   : > { %2048 = vst.msk [vmem:[#allocation2 + $0x30] sm:$0xff] %vm2041_vm8, %v2006_v24 }
 0x1dd   : > { %v2024_v25 = vpop.permute.xlu1 %2023 }
 0x1de   : > { %2057 = vst.msk [vmem:[#allocation2 + $0x78] sm:$0xff] %vm2041_vm8, %v2024_v25 }
 0x1df   : > { %v2008_v26 = vpop.permute.xlu0 %2007 }
 0x1e0   : > { %2049 = vst.msk [vmem:[#allocation2 + $0x38] sm:$0xff] %vm2041_vm8, %v2008_v26 }
 0x1e1   : > { %v2200_v27 = vpop.permute.xlu1 %2199 }
 0x1e2   : > { %2234 = vst.msk [vmem:[#allocation2 + $0x70] sm:$0xff] %vm2219_vm9, %v2200_v27 }
 0x1e3   : > { %v2184_v28 = vpop.permute.xlu0 %2183 }
 0x1e4   : > { %2226 = vst.msk [vmem:[#allocation2 + $0x30] sm:$0xff] %vm2219_vm9, %v2184_v28 }
 0x1e5   : > { %v2202_v22 = vpop.permute.xlu1 %2201 }
 0x1e6   : > { %2235 = vst.msk [vmem:[#allocation2 + $0x78] sm:$0xff] %vm2219_vm9, %v2202_v22 }
 0x1e7   : > { %v2186_v29 = vpop.permute.xlu0 %2185 }
 0x1e8   : > { %2227 = vst.msk [vmem:[#allocation2 + $0x38] sm:$0xff] %vm2219_vm9, %v2186_v29 }
 0x1e9   : > { %v2633_v30 = vpop.permute.xlu1 %2632 }
 0x1ea   : > { %2667 = vst.msk [vmem:[#allocation2 + $0x70] sm:$0xff] %vm2652_vm10, %v2633_v30 }
 0x1eb   : > { %v2617_v31 = vpop.permute.xlu0 %2616 }
 0x1ec   : > { %2659 = vst.msk [vmem:[#allocation2 + $0x30] sm:$0xff] %vm2652_vm10, %v2617_v31 }
 0x1ed   : > { %v2635_v32 = vpop.permute.xlu1 %2634 }
 0x1ee   : > { %2668 = vst.msk [vmem:[#allocation2 + $0x78] sm:$0xff] %vm2652_vm10, %v2635_v32 }
 0x1ef   : > { %v2619_v63 = vpop.permute.xlu0 %2618 }
 0x1f0   : > { %2660 = vst.msk [vmem:[#allocation2 + $0x38] sm:$0xff] %vm2652_vm10, %v2619_v63 }
 0x1f1   : > { %v2922_v33 = vpop.permute.xlu1 %2921 }
 0x1f2   : > { %2956 = vst.msk [vmem:[#allocation2 + $0x70] sm:$0xff] %vm2941_vm11, %v2922_v33 }
 0x1f3   : > { %v2906_v34 = vpop.permute.xlu0 %2905 }
 0x1f4   : > { %2948 = vst.msk [vmem:[#allocation2 + $0x30] sm:$0xff] %vm2941_vm11, %v2906_v34 }
 0x1f5   : > { %v2924_v35 = vpop.permute.xlu1 %2923 }
 0x1f6   : > { %2957 = vst.msk [vmem:[#allocation2 + $0x78] sm:$0xff] %vm2941_vm11, %v2924_v35 }
 0x1f7   : > { %v2908_v36 = vpop.permute.xlu0 %2907 }
 0x1f8   : > { %2949 = vst.msk [vmem:[#allocation2 + $0x38] sm:$0xff] %vm2941_vm11, %v2908_v36 }
 0x1f9   : > { %v2972_v37 = vld [vmem:[#allocation2 + $0x70] sm:$0xff] }
 0x1fa   : > { %4574 = vmatprep.mubr.bf16.mxu1 %v2972_v37 }
 0x1fb   : > { %v2964_v38 = vld [vmem:[#allocation2 + $0x30] sm:$0xff] }
 0x1fc   : > { %4558 = vmatprep.mubr.bf16.mxu0 %v2964_v38 }
 0x1fd   : > { %v2973_v39 = vld [vmem:[#allocation2 + $0x78] sm:$0xff] }
 0x1fe   : > { %4575 = vmatmul.mubr.bf16.gmra.mrb[12].mxu1 %v2973_v39 }
 0x1ff   : > { %v2965_v40 = vld [vmem:[#allocation2 + $0x38] sm:$0xff] }
 0x200   : > { %4559 = vmatmul.mubr.bf16.gmra.mrb[12].mxu0 %v2965_v40 }
 0x215   : > { %v4564_v45 = vpop.f32.mrb[0].mxu1 }
 0x216   : > { %v3224_v47 = vmul.f32 %v4564_v45, %v6201_v41  ;;  %v3136_v49 = vpop.f32.mrb[1].mxu1 }
 0x217   : > { %v4548_v42 = vpop.f32.mrb[0].mxu0  ;;  %v3222_v52 = vmul.f32 %v6201_v41, %v3136_v49  ;;  %v4565_v54 = vpop.f32.mrb[2].mxu1 }
 0x218   : > { %v3208_v44 = vmul.f32 %v4548_v42, %v6201_v41  ;;  %v3072_v46 = vpop.f32.mrb[1].mxu0  ;;  %v3263_v56 = vadd.f32 %v6203_v43, %v3224_v47  ;;  %v3225_v58 = vmul.f32 %v4565_v54, %v6201_v41  ;;  %v3139_v60 = vpop.f32.mrb[3].mxu1 }
 0x219   : > { %v3206_v48 = vmul.f32 %v6201_v41, %v3072_v46  ;;  %v4549_v50 = vpop.f32.mrb[2].mxu0  ;;  %v3261_v62 = vadd.f32 %v6203_v43, %v3222_v52  ;;  %v3223_v1 = vmul.f32 %v6201_v41, %v3139_v60 }
 0x21a   : > { %v6209_v51 = vadd.f32 %v6203_v43, %v3208_v44  ;;  %v3209_v53 = vmul.f32 %v4549_v50, %v6201_v41  ;;  %v3075_v55 = vpop.f32.mrb[3].mxu0  ;;  %v4327_v2 = vmul.f32 -1.442695, %v3263_v56  ;;  %v3264_v4 = vadd.f32 %v6203_v43, %v3225_v58 }
 0x21b   : > { %v6215_v57 = vadd.f32 %v6203_v43, %v3206_v48  ;;  %v3207_v59 = vmul.f32 %v6201_v41, %v3075_v55  ;;  %v4325_v6 = vmul.f32 -1.442695, %v3261_v62  ;;  %v3262_v8 = vadd.f32 %v6203_v43, %v3223_v1 }
 0x21c   : > { %v4311_v61 = vmul.f32 -1.442695, %v6209_v51  ;;  %v3248_v0 = vadd.f32 %v6203_v43, %v3209_v53  ;;  %v4328_v9 = vmul.f32 -1.442695, %v3264_v4 }
 0x21d   : > { %v4309_v3 = vmul.f32 -1.442695, %v6215_v57  ;;  %v3246_v5 = vadd.f32 %v6203_v43, %v3207_v59  ;;  %v4326_v12 = vmul.f32 -1.442695, %v3262_v8 }
 0x21e   : > { %4950 = vpow2.f32 %v4311_v61  ;;  %v4312_v7 = vmul.f32 -1.442695, %v3248_v0 }
 0x21f   : > { %4952 = vpow2.f32 %v4327_v2  ;;  %v4310_v10 = vmul.f32 -1.442695, %v3246_v5 }
 0x220   : > { %4954 = vpow2.f32 %v4309_v3 }
 0x221   : > { %4956 = vpow2.f32 %v4325_v6 }
 0x222   : > { %4958 = vpow2.f32 %v4312_v7 }
 0x223   : > { %4960 = vpow2.f32 %v4328_v9 }
 0x224   : > { %4962 = vpow2.f32 %v4310_v10 }
 0x225   : > { %4964 = vpow2.f32 %v4326_v12 }
 0x228   : > { %v4951_v13 = vpop.eup %4950 }
 0x229   : > { %v4953_v14 = vpop.eup %4952  ;;  %v3375_v15 = vadd.f32 1.0, %v4951_v13 }
 0x22a   : > { %v4955_v16 = vpop.eup %4954  ;;  %v3391_v17 = vadd.f32 1.0, %v4953_v14 }
 0x22b   : > { %v4957_v18 = vpop.eup %4956  ;;  %4966 = vrcp.f32 %v3375_v15  ;;  %v3373_v19 = vadd.f32 1.0, %v4955_v16 }
 0x22c   : > { %v4959_v20 = vpop.eup %4958  ;;  %4968 = vrcp.f32 %v3391_v17  ;;  %v3389_v21 = vadd.f32 1.0, %v4957_v18 }
 0x22d   : > { %v4961_v11 = vpop.eup %4960  ;;  %4970 = vrcp.f32 %v3373_v19  ;;  %v3376_v23 = vadd.f32 1.0, %v4959_v20 }
 0x22e   : > { %v4963_v24 = vpop.eup %4962  ;;  %4972 = vrcp.f32 %v3389_v21  ;;  %v3392_v25 = vadd.f32 1.0, %v4961_v11 }
 0x22f   : > { %v4965_v26 = vpop.eup %4964  ;;  %4974 = vrcp.f32 %v3376_v23  ;;  %v3374_v27 = vadd.f32 1.0, %v4963_v24 }
 0x230   : > { %4976 = vrcp.f32 %v3392_v25  ;;  %v3390_v28 = vadd.f32 1.0, %v4965_v26 }
 0x231   : > { %4978 = vrcp.f32 %v3374_v27 }
 0x232   : > { %4980 = vrcp.f32 %v3390_v28 }
 0x235   : > { %v4967_v22 = vpop.eup %4966 }
 0x236   : > { %v4969_v29 = vpop.eup %4968  ;;  %v3471_v33 = vmul.f32 %v4967_v22, %v6209_v51 }
 0x237   : > { %v4971_v30 = vpop.eup %4970  ;;  %v3487_v36 = vmul.f32 %v4969_v29, %v3263_v56 }
 0x238   : > { %v4973_v31 = vpop.eup %4972  ;;  %v3469_v39 = vmul.f32 %v4971_v30, %v6215_v57 }
 0x239   : > { %v4975_v32 = vpop.eup %4974  ;;  %v3485_v44 = vmul.f32 %v4973_v31, %v3261_v62 }
 0x23a   : > { %v4977_v63 = vpop.eup %4976  ;;  %v3472_v34 = vmul.f32 %v4975_v32, %v3248_v0 }
 0x23b   : > { %v4979_v35 = vpop.eup %4978  ;;  %v3488_v37 = vmul.f32 %v4977_v63, %v3264_v4 }
 0x23c   : > { %v4981_v38 = vpop.eup %4980  ;;  %v4419_v40 = vpack.c.bf16 %v3472_v34, %v3471_v33  ;;  %v3470_v42 = vmul.f32 %v4979_v35, %v3246_v5 }
 0x23d   : > { %v4459_v45 = vpack.c.bf16 %v3488_v37, %v3487_v36  ;;  %v3486_v46 = vmul.f32 %v4981_v38, %v3262_v8 }
 0x23e   : > { %4491 = vst [vmem:[%s6230_s8 + $0x8] sm:$0xff] %v4419_v40   ;;  %v4414_v47 = vpack.c.bf16 %v3470_v42, %v3469_v39 }
 0x23f   : > { %4499 = vst [vmem:[%s6230_s8 + $0x48] sm:$0xff] %v4459_v45   ;;  %v4454_v48 = vpack.c.bf16 %v3486_v46, %v3485_v44 }
 0x240   : > { %4415 = vst [vmem:[%s6230_s8] sm:$0xff] %v4414_v47  }
 0x241   : > { %4498 = vst [vmem:[%s6230_s8 + $0x40] sm:$0xff] %v4454_v48  }
 0x255   : > { %v4568_v49 = vpop.f32.mrb[4].mxu1 }
 0x256   : > { %v3228_v50 = vmul.f32 %v4568_v49, %v6201_v41  ;;  %v3152_v51 = vpop.f32.mrb[5].mxu1 }
 0x257   : > { %v3226_v52 = vmul.f32 %v6201_v41, %v3152_v51  ;;  %v4569_v53 = vpop.f32.mrb[6].mxu1  ;;  %v4552_v61 = vpop.f32.mrb[4].mxu0 }
 0x258   : > { %v6239_v54 = vadd.f32 %v6203_v43, %v3228_v50  ;;  %v3229_v55 = vmul.f32 %v4569_v53, %v6201_v41  ;;  %v3155_v56 = vpop.f32.mrb[7].mxu1  ;;  %v3212_v1 = vmul.f32 %v4552_v61, %v6201_v41  ;;  %v3088_v2 = vpop.f32.mrb[5].mxu0 }
 0x259   : > { %v3265_v57 = vadd.f32 %v6203_v43, %v3226_v52  ;;  %v3227_v58 = vmul.f32 %v6201_v41, %v3155_v56  ;;  %v3210_v4 = vmul.f32 %v6201_v41, %v3088_v2  ;;  %v4553_v5 = vpop.f32.mrb[6].mxu0 }
 0x25a   : > { %v4331_v59 = vmul.f32 -1.442695, %v6239_v54  ;;  %v3268_v60 = vadd.f32 %v6203_v43, %v3229_v55  ;;  %v3251_v7 = vadd.f32 %v6203_v43, %v3212_v1  ;;  %v3213_v8 = vmul.f32 %v4553_v5, %v6201_v41  ;;  %v3091_v9 = vpop.f32.mrb[7].mxu0 }
 0x25b   : > { %v4329_v62 = vmul.f32 -1.442695, %v3265_v57  ;;  %v3266_v0 = vadd.f32 %v6203_v43, %v3227_v58  ;;  %v3249_v10 = vadd.f32 %v6203_v43, %v3210_v4  ;;  %v3211_v12 = vmul.f32 %v6201_v41, %v3091_v9 }
 0x25c   : > { %4982 = vpow2.f32 %v4331_v59  ;;  %v4332_v3 = vmul.f32 -1.442695, %v3268_v60  ;;  %v4315_v13 = vmul.f32 -1.442695, %v3251_v7  ;;  %v3252_v14 = vadd.f32 %v6203_v43, %v3213_v8 }
 0x25d   : > { %4984 = vpow2.f32 %v4329_v62  ;;  %v4330_v6 = vmul.f32 -1.442695, %v3266_v0  ;;  %v4313_v15 = vmul.f32 -1.442695, %v3249_v10  ;;  %v3250_v16 = vadd.f32 %v6203_v43, %v3211_v12 }
 0x25e   : > { %4986 = vpow2.f32 %v4332_v3  ;;  %v4316_v17 = vmul.f32 -1.442695, %v3252_v14 }
 0x25f   : > { %4988 = vpow2.f32 %v4330_v6  ;;  %v4314_v18 = vmul.f32 -1.442695, %v3250_v16 }
 0x260   : > { %4990 = vpow2.f32 %v4315_v13 }
 0x261   : > { %4992 = vpow2.f32 %v4313_v15 }
 0x262   : > { %4994 = vpow2.f32 %v4316_v17 }
 0x263   : > { %4996 = vpow2.f32 %v4314_v18 }
 0x266   : > { %v4983_v19 = vpop.eup %4982 }
 0x267   : > { %v4985_v20 = vpop.eup %4984  ;;  %v3395_v21 = vadd.f32 1.0, %v4983_v19 }
 0x268   : > { %v4987_v11 = vpop.eup %4986  ;;  %v3393_v23 = vadd.f32 1.0, %v4985_v20 }
 0x269   : > { %v4989_v24 = vpop.eup %4988  ;;  %4998 = vrcp.f32 %v3395_v21  ;;  %v3396_v25 = vadd.f32 1.0, %v4987_v11 }
 0x26a   : > { %5000 = vrcp.f32 %v3393_v23  ;;  %v3394_v26 = vadd.f32 1.0, %v4989_v24  ;;  %v4991_v27 = vpop.eup %4990 }
 0x26b   : > { %5002 = vrcp.f32 %v3396_v25  ;;  %v4993_v28 = vpop.eup %4992  ;;  %v3379_v22 = vadd.f32 1.0, %v4991_v27 }
 0x26c   : > { %5004 = vrcp.f32 %v3394_v26  ;;  %v4995_v29 = vpop.eup %4994  ;;  %v3377_v30 = vadd.f32 1.0, %v4993_v28 }
 0x26d   : > { %v4997_v31 = vpop.eup %4996  ;;  %5006 = vrcp.f32 %v3379_v22  ;;  %v3380_v32 = vadd.f32 1.0, %v4995_v29 }
 0x26e   : > { %5008 = vrcp.f32 %v3377_v30  ;;  %v3378_v63 = vadd.f32 1.0, %v4997_v31 }
 0x26f   : > { %5010 = vrcp.f32 %v3380_v32 }
 0x270   : > { %5012 = vrcp.f32 %v3378_v63 }
 0x273   : > { %v4999_v33 = vpop.eup %4998 }
 0x274   : > { %v5001_v34 = vpop.eup %5000  ;;  %v3491_v37 = vmul.f32 %v4999_v33, %v6239_v54 }
 0x275   : > { %v5003_v35 = vpop.eup %5002  ;;  %v3489_v39 = vmul.f32 %v5001_v34, %v3265_v57 }
 0x276   : > { %v5005_v36 = vpop.eup %5004  ;;  %v3492_v38 = vmul.f32 %v5003_v35, %v3268_v60 }
 0x277   : > { %v3490_v40 = vmul.f32 %v5005_v36, %v3266_v0  ;;  %v5007_v44 = vpop.eup %5006 }
 0x278   : > { %v4469_v42 = vpack.c.bf16 %v3492_v38, %v3491_v37  ;;  %v5009_v46 = vpop.eup %5008  ;;  %v3475_v49 = vmul.f32 %v5007_v44, %v3251_v7 }
 0x279   : > { %v4464_v45 = vpack.c.bf16 %v3490_v40, %v3489_v39  ;;  %v5011_v47 = vpop.eup %5010  ;;  %v3473_v51 = vmul.f32 %v5009_v46, %v3249_v10 }
 0x27a   : > { %4501 = vst [vmem:[%s6230_s8 + $0x58] sm:$0xff] %v4469_v42   ;;  %v5013_v48 = vpop.eup %5012  ;;  %v3476_v50 = vmul.f32 %v5011_v47, %v3252_v14 }
 0x27b   : > { %4500 = vst [vmem:[%s6230_s8 + $0x50] sm:$0xff] %v4464_v45   ;;  %v3474_v52 = vmul.f32 %v5013_v48, %v3250_v16 }
 0x27c   : > { %v4429_v53 = vpack.c.bf16 %v3476_v50, %v3475_v49 }
 0x27d   : > { %v4424_v55 = vpack.c.bf16 %v3474_v52, %v3473_v51 }
 0x27e   : > { %4493 = vst [vmem:[%s6230_s8 + $0x18] sm:$0xff] %v4429_v53  }
 0x27f   : > { %4492 = vst [vmem:[%s6230_s8 + $0x10] sm:$0xff] %v4424_v55  }
 0x295   : > { %v4572_v54 = vpop.f32.mrb[8].mxu1 }
 0x296   : > { %v3232_v56 = vmul.f32 %v4572_v54, %v6201_v41  ;;  %v3168_v57 = vpop.f32.mrb[9].mxu1 }
 0x297   : > { %v3230_v58 = vmul.f32 %v6201_v41, %v3168_v57  ;;  %v4573_v59 = vpop.f32.mrb[10].mxu1  ;;  %v4556_v60 = vpop.f32.mrb[8].mxu0 }
 0x298   : > { %v3271_v61 = vadd.f32 %v6203_v43, %v3232_v56  ;;  %v3233_v62 = vmul.f32 %v4573_v59, %v6201_v41  ;;  %v3171_v0 = vpop.f32.mrb[11].mxu1  ;;  %v3216_v1 = vmul.f32 %v4556_v60, %v6201_v41  ;;  %v3104_v2 = vpop.f32.mrb[9].mxu0 }
 0x299   : > { %v6266_v3 = vadd.f32 %v6203_v43, %v3230_v58  ;;  %v3231_v4 = vmul.f32 %v6201_v41, %v3171_v0  ;;  %v3214_v6 = vmul.f32 %v6201_v41, %v3104_v2  ;;  %v4557_v7 = vpop.f32.mrb[10].mxu0 }
 0x29a   : > { %v4335_v5 = vmul.f32 -1.442695, %v3271_v61  ;;  %v3272_v8 = vadd.f32 %v6203_v43, %v3233_v62  ;;  %v3255_v9 = vadd.f32 %v6203_v43, %v3216_v1  ;;  %v3217_v12 = vmul.f32 %v4557_v7, %v6201_v41  ;;  %v3107_v13 = vpop.f32.mrb[11].mxu0 }
 0x29b   : > { %v4333_v10 = vmul.f32 -1.442695, %v6266_v3  ;;  %v3270_v14 = vadd.f32 %v6203_v43, %v3231_v4  ;;  %v3253_v15 = vadd.f32 %v6203_v43, %v3214_v6  ;;  %v3215_v17 = vmul.f32 %v6201_v41, %v3107_v13 }
 0x29c   : > { %5014 = vpow2.f32 %v4335_v5  ;;  %v4336_v16 = vmul.f32 -1.442695, %v3272_v8  ;;  %v4319_v18 = vmul.f32 -1.442695, %v3255_v9  ;;  %v3256_v19 = vadd.f32 %v6203_v43, %v3217_v12 }
 0x29d   : > { %5016 = vpow2.f32 %v4333_v10  ;;  %v4317_v20 = vmul.f32 -1.442695, %v3253_v15  ;;  %v3254_v21 = vadd.f32 %v6203_v43, %v3215_v17  ;;  %v4334_v23 = vmul.f32 -1.442695, %v3270_v14 }
 0x29e   : > { %5018 = vpow2.f32 %v4336_v16  ;;  %v4320_v11 = vmul.f32 -1.442695, %v3256_v19 }
 0x29f   : > { %5020 = vpow2.f32 %v4319_v18  ;;  %v4318_v24 = vmul.f32 -1.442695, %v3254_v21 }
 0x2a0   : > { %5022 = vpow2.f32 %v4317_v20 }
 0x2a1   : > { %5024 = vpow2.f32 %v4320_v11 }
 0x2a2   : > { %5026 = vpow2.f32 %v4318_v24 }
 0x2a3   : > { %5028 = vpow2.f32 %v4334_v23 }
 0x2a6   : > { %v5015_v25 = vpop.eup %5014 }
 0x2a7   : > { %v5017_v26 = vpop.eup %5016  ;;  %v3399_v27 = vadd.f32 1.0, %v5015_v25 }
 0x2a8   : > { %v5019_v28 = vpop.eup %5018  ;;  %v3397_v22 = vadd.f32 1.0, %v5017_v26 }
 0x2a9   : > { %v5021_v29 = vpop.eup %5020  ;;  %5030 = vrcp.f32 %v3399_v27  ;;  %v3400_v30 = vadd.f32 1.0, %v5019_v28 }
 0x2aa   : > { %v5023_v31 = vpop.eup %5022  ;;  %v3383_v32 = vadd.f32 1.0, %v5021_v29  ;;  %5032 = vrcp.f32 %v3397_v22 }
 0x2ab   : > { %v5025_v63 = vpop.eup %5024  ;;  %v3381_v33 = vadd.f32 1.0, %v5023_v31  ;;  %5034 = vrcp.f32 %v3400_v30 }
 0x2ac   : > { %v5027_v34 = vpop.eup %5026  ;;  %5036 = vrcp.f32 %v3383_v32  ;;  %v3384_v35 = vadd.f32 1.0, %v5025_v63 }
 0x2ad   : > { %v5029_v36 = vpop.eup %5028  ;;  %5038 = vrcp.f32 %v3381_v33  ;;  %v3382_v37 = vadd.f32 1.0, %v5027_v34 }
 0x2ae   : > { %5040 = vrcp.f32 %v3384_v35  ;;  %v3398_v38 = vadd.f32 1.0, %v5029_v36 }
 0x2af   : > { %5042 = vrcp.f32 %v3382_v37 }
 0x2b0   : > { %5044 = vrcp.f32 %v3398_v38 }
 0x2b3   : > { %v5031_v39 = vpop.eup %5030 }
 0x2b4   : > { %v5033_v40 = vpop.eup %5032  ;;  %v3495_v45 = vmul.f32 %v5031_v39, %v3271_v61 }
 0x2b5   : > { %v5035_v42 = vpop.eup %5034  ;;  %v3493_v56 = vmul.f32 %v5033_v40, %v6266_v3 }
 0x2b6   : > { %v5037_v44 = vpop.eup %5036  ;;  %v3496_v46 = vmul.f32 %v5035_v42, %v3272_v8 }
 0x2b7   : > { %v5039_v47 = vpop.eup %5038  ;;  %v3479_v51 = vmul.f32 %v5037_v44, %v3255_v9 }
 0x2b8   : > { %v5041_v48 = vpop.eup %5040  ;;  %v4479_v49 = vpack.c.bf16 %v3496_v46, %v3495_v45  ;;  %v3477_v55 = vmul.f32 %v5039_v47, %v3253_v15 }
 0x2b9   : > { %v5043_v50 = vpop.eup %5042  ;;  %v3480_v52 = vmul.f32 %v5041_v48, %v3256_v19 }
 0x2ba   : > { %v5045_v53 = vpop.eup %5044  ;;  %4503 = vst [vmem:[%s6230_s8 + $0x68] sm:$0xff] %v4479_v49   ;;  %v3478_v54 = vmul.f32 %v5043_v50, %v3254_v21 }
 0x2bb   : > { %v4439_v57 = vpack.c.bf16 %v3480_v52, %v3479_v51  ;;  %v3494_v58 = vmul.f32 %v5045_v53, %v3270_v14 }
 0x2bc   : > { %v4434_v59 = vpack.c.bf16 %v3478_v54, %v3477_v55 }
 0x2bd   : > { %4495 = vst [vmem:[%s6230_s8 + $0x28] sm:$0xff] %v4439_v57   ;;  %v4474_v60 = vpack.c.bf16 %v3494_v58, %v3493_v56 }
 0x2be   : > { %4494 = vst [vmem:[%s6230_s8 + $0x20] sm:$0xff] %v4434_v59  }
 0x2bf   : > { %4502 = vst [vmem:[%s6230_s8 + $0x60] sm:$0xff] %v4474_v60  }
 0x2d1   : > { %v4576_v61 = vpop.f32.mrb[12].mxu1 }
 0x2d2   : > { %v3236_v62 = vmul.f32 %v4576_v61, %v6201_v41  ;;  %v3184_v0 = vpop.f32.mrb[13].mxu1 }
 0x2d3   : > { %v4560_v1 = vpop.f32.mrb[12].mxu0  ;;  %v3234_v2 = vmul.f32 %v6201_v41, %v3184_v0  ;;  %v4577_v4 = vpop.f32.mrb[14].mxu1 }
 0x2d4   : > { %v3220_v5 = vmul.f32 %v4560_v1, %v6201_v41  ;;  %v6288_v6 = vadd.f32 %v6203_v43, %v3236_v62  ;;  %v3120_v3 = vpop.f32.mrb[13].mxu0  ;;  %v3237_v7 = vmul.f32 %v4577_v4, %v6201_v41  ;;  %v3187_v8 = vpop.f32.mrb[15].mxu1 }
 0x2d5   : > { %v3218_v9 = vmul.f32 %v6201_v41, %v3120_v3  ;;  %v6293_v10 = vadd.f32 %v6203_v43, %v3234_v2  ;;  %v4561_v12 = vpop.f32.mrb[14].mxu0  ;;  %v3235_v13 = vmul.f32 %v6201_v41, %v3187_v8 }
 0x2d6   : > { %v3259_v14 = vadd.f32 %v6203_v43, %v3220_v5  ;;  %v4339_v15 = vmul.f32 -1.442695, %v6288_v6  ;;  %v3221_v16 = vmul.f32 %v4561_v12, %v6201_v41  ;;  %v3276_v17 = vadd.f32 %v6203_v43, %v3237_v7  ;;  %v3123_v18 = vpop.f32.mrb[15].mxu0 }
 0x2d7   : > { %v3257_v19 = vadd.f32 %v6203_v43, %v3218_v9  ;;  %v4337_v20 = vmul.f32 -1.442695, %v6293_v10  ;;  %v3219_v21 = vmul.f32 %v6201_v41, %v3123_v18  ;;  %v3274_v11 = vadd.f32 %v6203_v43, %v3235_v13 }
 0x2d8   : > { %v4323_v23 = vmul.f32 -1.442695, %v3259_v14  ;;  %5046 = vpow2.f32 %v4339_v15  ;;  %v3260_v24 = vadd.f32 %v6203_v43, %v3221_v16  ;;  %v4340_v26 = vmul.f32 -1.442695, %v3276_v17 }
 0x2d9   : > { %v4321_v25 = vmul.f32 -1.442695, %v3257_v19  ;;  %5048 = vpow2.f32 %v4337_v20  ;;  %v3258_v27 = vadd.f32 %v6203_v43, %v3219_v21  ;;  %v4338_v29 = vmul.f32 -1.442695, %v3274_v11 }
 0x2da   : > { %5050 = vpow2.f32 %v4323_v23  ;;  %v4324_v28 = vmul.f32 -1.442695, %v3260_v24 }
 0x2db   : > { %5052 = vpow2.f32 %v4321_v25  ;;  %v4322_v22 = vmul.f32 -1.442695, %v3258_v27 }
 0x2dc   : > { %5054 = vpow2.f32 %v4324_v28 }
 0x2dd   : > { %5056 = vpow2.f32 %v4340_v26 }
 0x2de   : > { %5058 = vpow2.f32 %v4322_v22 }
 0x2df   : > { %5060 = vpow2.f32 %v4338_v29 }
 0x2e2   : > { %v5047_v41 = vpop.eup %5046 }
 0x2e3   : > { %v5049_v30 = vpop.eup %5048  ;;  %v3403_v31 = vadd.f32 1.0, %v5047_v41 }
 0x2e4   : > { %v5051_v32 = vpop.eup %5050  ;;  %v3401_v63 = vadd.f32 1.0, %v5049_v30 }
 0x2e5   : > { %v5053_v33 = vpop.eup %5052  ;;  %v3387_v34 = vadd.f32 1.0, %v5051_v32  ;;  %5062 = vrcp.f32 %v3403_v31 }
 0x2e6   : > { %v5055_v35 = vpop.eup %5054  ;;  %v3385_v36 = vadd.f32 1.0, %v5053_v33  ;;  %5064 = vrcp.f32 %v3401_v63 }
 0x2e7   : > { %v5057_v43 = vpop.eup %5056  ;;  %5066 = vrcp.f32 %v3387_v34  ;;  %v3388_v37 = vadd.f32 1.0, %v5055_v35 }
 0x2e8   : > { %v5059_v38 = vpop.eup %5058  ;;  %5068 = vrcp.f32 %v3385_v36  ;;  %v3404_v39 = vadd.f32 1.0, %v5057_v43 }
 0x2e9   : > { %v5061_v40 = vpop.eup %5060  ;;  %5070 = vrcp.f32 %v3388_v37  ;;  %v3386_v42 = vadd.f32 1.0, %v5059_v38 }
 0x2ea   : > { %5072 = vrcp.f32 %v3404_v39  ;;  %v3402_v44 = vadd.f32 1.0, %v5061_v40 }
 0x2eb   : > { %5074 = vrcp.f32 %v3386_v42 }
 0x2ec   : > { %5076 = vrcp.f32 %v3402_v44 }
 0x2ef   : > { %v5063_v45 = vpop.eup %5062 }
 0x2f0   : > { %v5065_v46 = vpop.eup %5064  ;;  %v3499_v55 = vmul.f32 %v5063_v45, %v6288_v6 }
 0x2f1   : > { %v5067_v47 = vpop.eup %5066  ;;  %v3497_v60 = vmul.f32 %v5065_v46, %v6293_v10 }
 0x2f2   : > { %v5069_v48 = vpop.eup %5068  ;;  %v3483_v51 = vmul.f32 %v5067_v47, %v3259_v14 }
 0x2f3   : > { %v5071_v49 = vpop.eup %5070  ;;  %v3481_v57 = vmul.f32 %v5069_v48, %v3257_v19 }
 0x2f4   : > { %v5073_v50 = vpop.eup %5072  ;;  %v3484_v52 = vmul.f32 %v5071_v49, %v3260_v24 }
 0x2f5   : > { %v5075_v53 = vpop.eup %5074  ;;  %v3500_v54 = vmul.f32 %v5073_v50, %v3276_v17 }
 0x2f6   : > { %v5077_v56 = vpop.eup %5076  ;;  %v4449_v58 = vpack.c.bf16 %v3484_v52, %v3483_v51  ;;  %v3482_v59 = vmul.f32 %v5075_v53, %v3258_v27 }
 0x2f7   : > { %v4489_v61 = vpack.c.bf16 %v3500_v54, %v3499_v55  ;;  %v3498_v62 = vmul.f32 %v5077_v56, %v3274_v11 }
 0x2f8   : > { %4497 = vst [vmem:[%s6230_s8 + $0x38] sm:$0xff] %v4449_v58   ;;  %v4444_v0 = vpack.c.bf16 %v3482_v59, %v3481_v57 }
 0x2f9   : > { %4505 = vst [vmem:[%s6230_s8 + $0x78] sm:$0xff] %v4489_v61   ;;  %v4484_v1 = vpack.c.bf16 %v3498_v62, %v3497_v60 }
 0x2fa   : > { %4496 = vst [vmem:[%s6230_s8 + $0x30] sm:$0xff] %v4444_v0  }
 0x2fb   : > { %4504 = vst [vmem:[%s6230_s8 + $0x70] sm:$0xff] %v4484_v1  }
 0x2fc   : > { %5205 = shalt.err (!%p5202_p0)
}
 0x2fd   : > { %s5206_s22 = scalar_lea.hbm %s6314_s28, 2048  ;;  %s5210_s10 = scalar_lea.hbm %s6373_s4, 4096 }
 0x2fe   : > { %p5207_p4 = scmp.ne.s32.totalorder %s6314_s28, %s5206_s22  ;;  %p5211_p12 = scmp.lt.u32.totalorder %s6314_s28, %s6373_s4 }
 0x2ff   : > { %p5212_p1 = scmp.lt.u32.totalorder %s5210_s10, %s5206_s22  ;;  %p5214_p13 = scmp.lt.u32.totalorder %s5206_s22, %s6314_s28 }
 0x300   : > { %p5208_p2 = pnand %p5207_p4, %p5481_p10 }
 0x301   : > { %p5213_p11 = por %p5212_p1, %p5211_p12 }
 0x302   : > { %p5209_p8 = pneg %p5208_p2 }
 0x303   : > { %p5215_p6 = por %p5214_p13, %p5213_p11 }
 0x305   : > { %p5216_p3 = pnand %p5215_p6, %p5209_p8 }
 0x307   : > { %5219 = shalt.err (!%p5216_p3)
}
 0x308   : > { %s5300_s6 = smov 64  }
 0x309   : > { %4611 = dma.vmem_to_hbm [thread:$0]  (%p5481_p10), %s6317_s5, 2048, %s6314_s28, %s3662_s18, %s5300_s6, %s5300_s6, %s5292_s27  }
 0x30a PF: > { %s6395_s13 = sld [smem:[#allocation16_spill]]  ;;  %s3692_s21 = sand.u32 1, %s5262_s15  }
 0x30b   : > { %p6397_p7 = scmp.ge.s32.totalorder %s5282_s20, 2  ;;  %s3693_s29 = scalar_lea.sflag [#allocation5], %s3692_s21 }
 0x310   : > { %p6396_p5 = scmp.ne.s32.totalorder %s6395_s13, 0 }
 0x312   : > { %p4628_p9 = pnand %p6397_p7, %p6396_p5 }
 0x314   : > { %5257 = dma.done.wait (!%p4628_p9), %s3693_s29, 2048  }
 0x315   : > { %5259 = vsyncadd (!%p4628_p9), %s3693_s29, 4294965248  ;;  %s22_s20 = sadd.s32 1, %s5282_s20   ;;  %s6398_s15 = smov %s5266_s16 }
 0x316   : > { %p19_p0 = scmp.ge.s32.totalorder %s22_s20, 4   ;;  %s6399_s16 = smov %s5270_s17 }
 0x317   : > { %s6400_s17 = smov %s5497_s24  ;;  %s6401_s18 = smov %s5278_s19 }
 0x318   : > { %s6402_s19 = smov %s6404_s11  ;;  %21 = sbr.rel (!%p19_p0) target bundleno = 8 (0x8), region = 95 }
 0x31f   :  { %3698 = vsyncpa [#allocation4], 1 }
 0x320   :  { %3700 = vsyncpa [#allocation4 + $0x1], 1 }
 0x321   :  { %3701 = vsyncpa [#allocation7], 1 }
 0x322   :  { %3702 = vsyncpa [#allocation10], 1 }
 0x323   :  { %3703 = vsyncpa [#allocation5], 1 }
 0x324   :  { %3705 = vsyncpa [#allocation5 + $0x1], 1 }

</bundles_post_ra>
